<compile_context>
chip_gen: v6e
topology: v6e:2x2x1
jax: 0.10.0
libtpu: 0.0.40
codegen_flags: <defaults>
</compile_context>

<pallas_src>
from functools import partial

import jax
import jax.numpy as jnp
from jax.experimental import pallas as pl
from jax.experimental.pallas import tpu as pltpu

BASE_LOSS_DICT = {'ce_loss': 0, 'kl_loss': 1}


def _round_up(x, m):
    return ((x + m - 1) // m) * m


# ----------------------------------------------------------------------------
# Pallas kernel: fused main+peer ClsModel forward (per-batch-element grid)
#   3x3 conv as 9 shifted matmuls -> bias -> ReLU -> masked pool matmul
#   -> fused classifier heads -> one lane-dense (1, NPAD) store per step
# ----------------------------------------------------------------------------
def _cls_pair_forward(xflat, mask_row, wt, bc, wh, bh, *, height, width):
    B, P, C = xflat.shape            # P = (H+2)*(W+2), raw channel count C
    L = mask_row.shape[-1]           # H*(W+2) - 2 flattened conv-output rows
    FPAD = wt.shape[-1]              # fused (main|peer) feature axis, >=128
    NPAD = wh.shape[-1]              # fused logit axis, >=128
    Wp = width + 2
    inv_hw = 1.0 / float(height * width)

    def kernel(x_ref, mask_ref, wt_ref, bc_ref, wh_ref, bh_ref, out_ref):
        # x_ref: (P, C) bf16 padded image (channel-last, spatially flattened).
        # 3x3 conv == 9 accumulated (L, C) x (C, FPAD) matmuls over slices of
        # the flattened image shifted by di*(W+2)+dj rows (no HBM im2col).
        feat = jnp.zeros((L, FPAD), jnp.float32)
        for t in range(9):
            di, dj = divmod(t, 3)
            xs = x_ref[pl.ds(di * Wp + dj, L), :]            # (L, C) bf16
            feat = feat + jnp.dot(xs, wt_ref[t],
                                  preferred_element_type=jnp.float32)
        feat = jnp.maximum(feat + bc_ref[...], 0.0)          # bias + ReLU, f32
        # Global average pool: masked (1, L) x (L, FPAD) matmul; the 0/1 mask
        # zeroes the two garbage columns per flattened image row, the 1/HW
        # scale stays in f32.
        pooled = jnp.dot(mask_ref[...], feat.astype(jnp.bfloat16),
                         preferred_element_type=jnp.float32) * inv_hw
        out_ref[...] = (jnp.dot(pooled, wh_ref[...],
                                preferred_element_type=jnp.float32)
                        + bh_ref[...])                       # (1, NPAD)

    flops = B * (2 * 9 * L * C * FPAD + 2 * L * FPAD + 2 * FPAD * NPAD)
    bytes_accessed = (xflat.size * 2 + mask_row.size * 2 + wt.size * 2
                      + (bc.size + wh.size + bh.size) * 4 + B * NPAD * 4)

    out = pl.pallas_call(
        kernel,
        out_shape=jax.ShapeDtypeStruct((B, 1, NPAD), jnp.float32),
        grid=(B,),
        in_specs=[
            pl.BlockSpec((None, P, C), lambda b: (b, 0, 0)),     # per-b image
            pl.BlockSpec((1, L), lambda b: (0, 0)),              # pool mask
            pl.BlockSpec((9, C, FPAD), lambda b: (0, 0, 0)),     # conv taps
            pl.BlockSpec((1, FPAD), lambda b: (0, 0)),           # conv bias
            pl.BlockSpec((FPAD, NPAD), lambda b: (0, 0)),        # head weights
            pl.BlockSpec((1, NPAD), lambda b: (0, 0)),           # head bias
        ],
        out_specs=pl.BlockSpec((None, 1, NPAD), lambda b: (b, 0, 0)),
        compiler_params=pltpu.CompilerParams(
            dimension_semantics=("parallel",),
            vmem_limit_bytes=32 * 1024 * 1024),
        cost_estimate=pl.CostEstimate(flops=flops, transcendentals=0,
                                      bytes_accessed=bytes_accessed),
    )(xflat, mask_row, wt, bc, wh, bh)
    return out.reshape(B, NPAD)


# ----------------------------------------------------------------------------
# Parameter init: fuse main|peer once, in kernel layout, padded + bf16-cast
# ----------------------------------------------------------------------------
def _init_fused_params(key, in_channels, feat_dim, num_classes_list):
    C, F = in_channels, feat_dim
    fpad = _round_up(max(2 * F, 128), 128)        # fused feature axis -> lanes
    ntot = sum(num_classes_list)
    npad = _round_up(max(2 * ntot, 128), 128)     # fused logit axis -> lanes

    wt = jnp.zeros((9, C, fpad), jnp.float32)     # tap-major conv weights
    bc = jnp.zeros((1, fpad), jnp.float32)
    wh = jnp.zeros((fpad, npad), jnp.float32)     # block-structured heads
    bh = jnp.zeros((1, npad), jnp.float32)        # per-branch disjoint columns

    n_heads = len(num_classes_list)
    keys = iter(jax.random.split(key, 2 * (2 + 2 * n_heads)))
    conv_bound = (C * 9) ** -0.5
    head_bound = F ** -0.5
    for b in range(2):                            # 0 = main, 1 = peer
        foff, coff = b * F, b * ntot
        wconv = 0.1 * jax.random.normal(next(keys), (F, C, 3, 3), jnp.float32)
        # PyTorch layout (F, C, 3, 3) -> (3, 3, C, F) -> (9, C, F), once.
        wt = wt.at[:, :, foff:foff + F].set(
            wconv.transpose(2, 3, 1, 0).reshape(9, C, F))
        bc = bc.at[:, foff:foff + F].set(
            jax.random.uniform(next(keys), (1, F), jnp.float32,
                               -conv_bound, conv_bound))
        off = coff
        for n in num_classes_list:
            whead = 0.1 * jax.random.normal(next(keys), (F, n), jnp.float32)
            bhead = jax.random.uniform(next(keys), (1, n), jnp.float32,
                                       -head_bound, head_bound)
            wh = wh.at[foff:foff + F, off:off + n].set(whead)
            bh = bh.at[:, off:off + n].set(bhead)
            off += n
    return {'wt': wt.astype(jnp.bfloat16), 'bc': bc, 'wh': wh, 'bh': bh}


# ----------------------------------------------------------------------------
# Jitted forward core: cheap input prologue + one fused Pallas kernel
# ----------------------------------------------------------------------------
@partial(jax.jit, static_argnames=('num_classes',))
def _distill_forward_core(fused, img, *, num_classes):
    B, C, H, W = img.shape
    # Prologue (~input-sized): 1-pixel halo pad, channel-last, flatten, bf16.
    xq = img.astype(jnp.bfloat16)
    xp = jnp.pad(xq, ((0, 0), (0, 0), (1, 1), (1, 1)))
    xflat = xp.transpose(0, 2, 3, 1).reshape(B, (H + 2) * (W + 2), C)
    # ~1 KB 0/1 pooling mask over the flattened conv-output rows.
    L = H * (W + 2) - 2
    col = jax.lax.broadcasted_iota(jnp.int32, (H, W + 2), 1)
    mask_row = (col < W).astype(jnp.bfloat16).reshape(1, H * (W + 2))[:, :L]

    out = _cls_pair_forward(xflat, mask_row, fused['wt'], fused['bc'],
                            fused['wh'], fused['bh'], height=H, width=W)

    ncl = list(num_classes)
    outs, off = [], 0
    for _branch in range(2):          # main then peer
        for n in ncl:
            outs.append(out[:, off:off + n])
            off += n
    return tuple(outs)


# ----------------------------------------------------------------------------
# DistillModel
# ----------------------------------------------------------------------------
class DistillModel:
    def __init__(self, num_classes_list, in_channels=4, feat_dim=32,
                 distill_method='teacher-student', seed=0):
        assert distill_method in (None, 'teacher-student', 'student-student')
        self.num_classes_list = list(num_classes_list)
        self.in_channels = in_channels
        self.feat_dim = feat_dim

        self.valid_loss_dict = {
            'main': {f'main_ce_loss{i}': 1.0
                     for i in range(len(num_classes_list))},
            'peer': {f'peer_ce_loss{i}': 1.0
                     for i in range(len(num_classes_list))},
        }
        for i in range(len(num_classes_list)):
            self.valid_loss_dict[f'main_kl_loss{i}'] = 1.0
            self.valid_loss_dict[f'peer_kl_loss{i}'] = 1.0

        self.fused_params = _init_fused_params(
            jax.random.PRNGKey(seed), in_channels, feat_dim,
            self.num_classes_list)

        self.temperature = 1.0
        self.freeze_main = False
        if distill_method == 'teacher-student':
            self.temperature = 10.0
            self.freeze_main = True
        # TODO(synk): requires_grad=False on the main branch is an
        # optimizer/backward-side concern (forward values are unchanged); it
        # is recorded as self.freeze_main but not applied to the fused params.

    def forward(self, data_dict):
        x = data_dict['img']
        outs = _distill_forward_core(self.fused_params, x,
                                     num_classes=tuple(self.num_classes_list))
        k = len(self.num_classes_list)
        branch_outs = {'main': outs[:k], 'peer': outs[k:]}

        out_dict, label_dict, loss_dict = {}, {}, {}
        for flag in ('main', 'peer'):
            cfg = self.valid_loss_dict[flag]
            for i, out in enumerate(branch_outs[flag]):
                out_dict[f'{flag}_out{i}'] = out
                lbl_key = f'label{i}'
                ce_key = f'{flag}_ce_loss{i}'
                if lbl_key in data_dict:
                    label_dict[f'{flag}_label{i}'] = data_dict[lbl_key]
                    if ce_key in cfg:
                        loss_dict[ce_key] = dict(
                            params=[out, data_dict[lbl_key]],
                            type=jnp.array([BASE_LOSS_DICT['ce_loss']],
                                           jnp.int32),
                            weight=jnp.array([cfg[ce_key]], jnp.float32))

        if 'img' in data_dict:
            for i in range(len(self.num_classes_list)):
                mk = f'main_kl_loss{i}'
                if mk in self.valid_loss_dict:
                    loss_dict[mk] = dict(
                        params=[out_dict[f'main_out{i}'],
                                jax.lax.stop_gradient(
                                    out_dict[f'peer_out{i}'])],
                        type=jnp.array([BASE_LOSS_DICT['kl_loss']], jnp.int32),
                        weight=jnp.array([self.valid_loss_dict[mk]],
                                         jnp.float32))
                pk = f'peer_kl_loss{i}'
                if pk in self.valid_loss_dict:
                    loss_dict[pk] = dict(
                        params=[out_dict[f'peer_out{i}'] / self.temperature,
                                jax.lax.stop_gradient(
                                    out_dict[f'main_out{i}'])
                                / self.temperature],
                        type=jnp.array([BASE_LOSS_DICT['kl_loss']], jnp.int32),
                        weight=jnp.array([self.valid_loss_dict[pk]],
                                         jnp.float32))
        return out_dict, label_dict, loss_dict

    # TODO(synk): CE/KL loss reductions are packaged (params/type/weight) as
    # in torchcv; the actual reductions live outside this module.


# ----------------------------------------------------------------------------
if __name__ == "__main__":
    key = jax.random.PRNGKey(0)
    kx, kl0, kl1 = jax.random.split(key, 3)

    B, C, H, W = 2, 4, 16, 16
    num_classes_list = [10, 5]

    data_dict = {
        'img': jax.random.normal(kx, (B, C, H, W), jnp.float32),   # NCHW
        'label0': jax.random.randint(kl0, (B,), 0, num_classes_list[0]),
        'label1': jax.random.randint(kl1, (B,), 0, num_classes_list[1]),
    }

    model = DistillModel(num_classes_list, in_channels=C, feat_dim=32,
                         distill_method='teacher-student', seed=0)
    out_dict, label_dict, loss_dict = model.forward(data_dict)
    jax.block_until_ready(out_dict)

    assert out_dict['main_out0'].shape == (B, num_classes_list[0])
    assert out_dict['main_out1'].shape == (B, num_classes_list[1])
    assert out_dict['peer_out0'].shape == (B, num_classes_list[0])
    assert out_dict['peer_out1'].shape == (B, num_classes_list[1])
    assert 'main_kl_loss0' in loss_dict and 'peer_kl_loss1' in loss_dict
    assert 'main_ce_loss0' in loss_dict and 'peer_ce_loss1' in loss_dict
    assert all(jnp.all(jnp.isfinite(v)) for v in out_dict.values())

    print("KERNEL_OK")
</pallas_src>

<mosaic_0001>
module attributes {stable_mosaic.version = 11 : i64} {
  func.func @kernel(%arg0: i32, %arg1: memref<1x324x4xbf16, #tpu.memory_space<vmem>>, %arg2: memref<1x286xbf16, #tpu.memory_space<vmem>>, %arg3: memref<9x4x128xbf16, #tpu.memory_space<vmem>>, %arg4: memref<1x128xf32, #tpu.memory_space<vmem>>, %arg5: memref<128x128xf32, #tpu.memory_space<vmem>>, %arg6: memref<1x128xf32, #tpu.memory_space<vmem>>, %arg7: memref<1x1x128xf32, #tpu.memory_space<vmem>>) attributes {dimension_semantics = [#tpu.dimension_semantics<parallel>], iteration_bounds = array<i64: 2>, scalar_prefetch = 0 : i64, scratch_operands = 0 : i64, tpu.core_type = #tpu.core_type<tc>, window_params = [{transform_indices = @transform_0, window_bounds = array<i64: 1, 324, 4>}, {pipeline_mode = #tpu.pipeline_mode<synchronous>, transform_indices = @transform_1, window_bounds = array<i64: 1, 286>}, {pipeline_mode = #tpu.pipeline_mode<synchronous>, transform_indices = @transform_2, window_bounds = array<i64: 9, 4, 128>}, {pipeline_mode = #tpu.pipeline_mode<synchronous>, transform_indices = @transform_3, window_bounds = array<i64: 1, 128>}, {pipeline_mode = #tpu.pipeline_mode<synchronous>, transform_indices = @transform_4, window_bounds = array<i64: 128, 128>}, {pipeline_mode = #tpu.pipeline_mode<synchronous>, transform_indices = @transform_5, window_bounds = array<i64: 1, 128>}, {transform_indices = @transform_6, window_bounds = array<i64: 1, 1, 128>}]} {
    %cst = arith.constant 0.000000e+00 : f32
    %0 = vector.broadcast %cst : f32 to vector<286x128xf32>
    %c0 = arith.constant 0 : index
    %c0_0 = arith.constant 0 : index
    %c0_1 = arith.constant 0 : index
    %1 = vector.load %arg1[%c0, %c0_0, %c0_1] : memref<1x324x4xbf16, #tpu.memory_space<vmem>>, vector<1x286x4xbf16>
    %2 = vector.shape_cast %1 : vector<1x286x4xbf16> to vector<286x4xbf16>
    %c0_2 = arith.constant 0 : index
    %c0_3 = arith.constant 0 : index
    %c0_4 = arith.constant 0 : index
    %3 = vector.load %arg3[%c0_2, %c0_3, %c0_4] : memref<9x4x128xbf16, #tpu.memory_space<vmem>>, vector<1x4x128xbf16>
    %4 = vector.shape_cast %3 : vector<1x4x128xbf16> to vector<4x128xbf16>
    %cst_5 = arith.constant dense<0.000000e+00> : vector<286x128xf32>
    %5 = tpu.matmul %2, %4, %cst_5 {dimension_numbers = #tpu.dot_dimension_numbers<[1], [0], [0], [1], [0, 0, 1, 1], [], []>} : vector<286x4xbf16>, vector<4x128xbf16>, vector<286x128xf32> -> vector<286x128xf32>
    %6 = arith.addf %0, %5 : vector<286x128xf32>
    %c0_6 = arith.constant 0 : index
    %c1 = arith.constant 1 : index
    %c0_7 = arith.constant 0 : index
    %7 = vector.load %arg1[%c0_6, %c1, %c0_7] : memref<1x324x4xbf16, #tpu.memory_space<vmem>>, vector<1x286x4xbf16>
    %8 = vector.shape_cast %7 : vector<1x286x4xbf16> to vector<286x4xbf16>
    %c1_8 = arith.constant 1 : index
    %c0_9 = arith.constant 0 : index
    %c0_10 = arith.constant 0 : index
    %9 = vector.load %arg3[%c1_8, %c0_9, %c0_10] : memref<9x4x128xbf16, #tpu.memory_space<vmem>>, vector<1x4x128xbf16>
    %10 = vector.shape_cast %9 : vector<1x4x128xbf16> to vector<4x128xbf16>
    %cst_11 = arith.constant dense<0.000000e+00> : vector<286x128xf32>
    %11 = tpu.matmul %8, %10, %cst_11 {dimension_numbers = #tpu.dot_dimension_numbers<[1], [0], [0], [1], [0, 0, 1, 1], [], []>} : vector<286x4xbf16>, vector<4x128xbf16>, vector<286x128xf32> -> vector<286x128xf32>
    %12 = arith.addf %6, %11 : vector<286x128xf32>
    %c0_12 = arith.constant 0 : index
    %c2 = arith.constant 2 : index
    %c0_13 = arith.constant 0 : index
    %13 = vector.load %arg1[%c0_12, %c2, %c0_13] : memref<1x324x4xbf16, #tpu.memory_space<vmem>>, vector<1x286x4xbf16>
    %14 = vector.shape_cast %13 : vector<1x286x4xbf16> to vector<286x4xbf16>
    %c2_14 = arith.constant 2 : index
    %c0_15 = arith.constant 0 : index
    %c0_16 = arith.constant 0 : index
    %15 = vector.load %arg3[%c2_14, %c0_15, %c0_16] : memref<9x4x128xbf16, #tpu.memory_space<vmem>>, vector<1x4x128xbf16>
    %16 = vector.shape_cast %15 : vector<1x4x128xbf16> to vector<4x128xbf16>
    %cst_17 = arith.constant dense<0.000000e+00> : vector<286x128xf32>
    %17 = tpu.matmul %14, %16, %cst_17 {dimension_numbers = #tpu.dot_dimension_numbers<[1], [0], [0], [1], [0, 0, 1, 1], [], []>} : vector<286x4xbf16>, vector<4x128xbf16>, vector<286x128xf32> -> vector<286x128xf32>
    %18 = arith.addf %12, %17 : vector<286x128xf32>
    %c0_18 = arith.constant 0 : index
    %c18 = arith.constant 18 : index
    %c0_19 = arith.constant 0 : index
    %19 = vector.load %arg1[%c0_18, %c18, %c0_19] : memref<1x324x4xbf16, #tpu.memory_space<vmem>>, vector<1x286x4xbf16>
    %20 = vector.shape_cast %19 : vector<1x286x4xbf16> to vector<286x4xbf16>
    %c3 = arith.constant 3 : index
    %c0_20 = arith.constant 0 : index
    %c0_21 = arith.constant 0 : index
    %21 = vector.load %arg3[%c3, %c0_20, %c0_21] : memref<9x4x128xbf16, #tpu.memory_space<vmem>>, vector<1x4x128xbf16>
    %22 = vector.shape_cast %21 : vector<1x4x128xbf16> to vector<4x128xbf16>
    %cst_22 = arith.constant dense<0.000000e+00> : vector<286x128xf32>
    %23 = tpu.matmul %20, %22, %cst_22 {dimension_numbers = #tpu.dot_dimension_numbers<[1], [0], [0], [1], [0, 0, 1, 1], [], []>} : vector<286x4xbf16>, vector<4x128xbf16>, vector<286x128xf32> -> vector<286x128xf32>
    %24 = arith.addf %18, %23 : vector<286x128xf32>
    %c0_23 = arith.constant 0 : index
    %c19 = arith.constant 19 : index
    %c0_24 = arith.constant 0 : index
    %25 = vector.load %arg1[%c0_23, %c19, %c0_24] : memref<1x324x4xbf16, #tpu.memory_space<vmem>>, vector<1x286x4xbf16>
    %26 = vector.shape_cast %25 : vector<1x286x4xbf16> to vector<286x4xbf16>
    %c4 = arith.constant 4 : index
    %c0_25 = arith.constant 0 : index
    %c0_26 = arith.constant 0 : index
    %27 = vector.load %arg3[%c4, %c0_25, %c0_26] : memref<9x4x128xbf16, #tpu.memory_space<vmem>>, vector<1x4x128xbf16>
    %28 = vector.shape_cast %27 : vector<1x4x128xbf16> to vector<4x128xbf16>
    %cst_27 = arith.constant dense<0.000000e+00> : vector<286x128xf32>
    %29 = tpu.matmul %26, %28, %cst_27 {dimension_numbers = #tpu.dot_dimension_numbers<[1], [0], [0], [1], [0, 0, 1, 1], [], []>} : vector<286x4xbf16>, vector<4x128xbf16>, vector<286x128xf32> -> vector<286x128xf32>
    %30 = arith.addf %24, %29 : vector<286x128xf32>
    %c0_28 = arith.constant 0 : index
    %c20 = arith.constant 20 : index
    %c0_29 = arith.constant 0 : index
    %31 = vector.load %arg1[%c0_28, %c20, %c0_29] : memref<1x324x4xbf16, #tpu.memory_space<vmem>>, vector<1x286x4xbf16>
    %32 = vector.shape_cast %31 : vector<1x286x4xbf16> to vector<286x4xbf16>
    %c5 = arith.constant 5 : index
    %c0_30 = arith.constant 0 : index
    %c0_31 = arith.constant 0 : index
    %33 = vector.load %arg3[%c5, %c0_30, %c0_31] : memref<9x4x128xbf16, #tpu.memory_space<vmem>>, vector<1x4x128xbf16>
    %34 = vector.shape_cast %33 : vector<1x4x128xbf16> to vector<4x128xbf16>
    %cst_32 = arith.constant dense<0.000000e+00> : vector<286x128xf32>
    %35 = tpu.matmul %32, %34, %cst_32 {dimension_numbers = #tpu.dot_dimension_numbers<[1], [0], [0], [1], [0, 0, 1, 1], [], []>} : vector<286x4xbf16>, vector<4x128xbf16>, vector<286x128xf32> -> vector<286x128xf32>
    %36 = arith.addf %30, %35 : vector<286x128xf32>
    %c0_33 = arith.constant 0 : index
    %c36 = arith.constant 36 : index
    %c0_34 = arith.constant 0 : index
    %37 = vector.load %arg1[%c0_33, %c36, %c0_34] : memref<1x324x4xbf16, #tpu.memory_space<vmem>>, vector<1x286x4xbf16>
    %38 = vector.shape_cast %37 : vector<1x286x4xbf16> to vector<286x4xbf16>
    %c6 = arith.constant 6 : index
    %c0_35 = arith.constant 0 : index
    %c0_36 = arith.constant 0 : index
    %39 = vector.load %arg3[%c6, %c0_35, %c0_36] : memref<9x4x128xbf16, #tpu.memory_space<vmem>>, vector<1x4x128xbf16>
    %40 = vector.shape_cast %39 : vector<1x4x128xbf16> to vector<4x128xbf16>
    %cst_37 = arith.constant dense<0.000000e+00> : vector<286x128xf32>
    %41 = tpu.matmul %38, %40, %cst_37 {dimension_numbers = #tpu.dot_dimension_numbers<[1], [0], [0], [1], [0, 0, 1, 1], [], []>} : vector<286x4xbf16>, vector<4x128xbf16>, vector<286x128xf32> -> vector<286x128xf32>
    %42 = arith.addf %36, %41 : vector<286x128xf32>
    %c0_38 = arith.constant 0 : index
    %c37 = arith.constant 37 : index
    %c0_39 = arith.constant 0 : index
    %43 = vector.load %arg1[%c0_38, %c37, %c0_39] : memref<1x324x4xbf16, #tpu.memory_space<vmem>>, vector<1x286x4xbf16>
    %44 = vector.shape_cast %43 : vector<1x286x4xbf16> to vector<286x4xbf16>
    %c7 = arith.constant 7 : index
    %c0_40 = arith.constant 0 : index
    %c0_41 = arith.constant 0 : index
    %45 = vector.load %arg3[%c7, %c0_40, %c0_41] : memref<9x4x128xbf16, #tpu.memory_space<vmem>>, vector<1x4x128xbf16>
    %46 = vector.shape_cast %45 : vector<1x4x128xbf16> to vector<4x128xbf16>
    %cst_42 = arith.constant dense<0.000000e+00> : vector<286x128xf32>
    %47 = tpu.matmul %44, %46, %cst_42 {dimension_numbers = #tpu.dot_dimension_numbers<[1], [0], [0], [1], [0, 0, 1, 1], [], []>} : vector<286x4xbf16>, vector<4x128xbf16>, vector<286x128xf32> -> vector<286x128xf32>
    %48 = arith.addf %42, %47 : vector<286x128xf32>
    %c0_43 = arith.constant 0 : index
    %c38 = arith.constant 38 : index
    %c0_44 = arith.constant 0 : index
    %49 = vector.load %arg1[%c0_43, %c38, %c0_44] : memref<1x324x4xbf16, #tpu.memory_space<vmem>>, vector<1x286x4xbf16>
    %50 = vector.shape_cast %49 : vector<1x286x4xbf16> to vector<286x4xbf16>
    %c8 = arith.constant 8 : index
    %c0_45 = arith.constant 0 : index
    %c0_46 = arith.constant 0 : index
    %51 = vector.load %arg3[%c8, %c0_45, %c0_46] : memref<9x4x128xbf16, #tpu.memory_space<vmem>>, vector<1x4x128xbf16>
    %52 = vector.shape_cast %51 : vector<1x4x128xbf16> to vector<4x128xbf16>
    %cst_47 = arith.constant dense<0.000000e+00> : vector<286x128xf32>
    %53 = tpu.matmul %50, %52, %cst_47 {dimension_numbers = #tpu.dot_dimension_numbers<[1], [0], [0], [1], [0, 0, 1, 1], [], []>} : vector<286x4xbf16>, vector<4x128xbf16>, vector<286x128xf32> -> vector<286x128xf32>
    %54 = arith.addf %48, %53 : vector<286x128xf32>
    %c0_48 = arith.constant 0 : index
    %c0_49 = arith.constant 0 : index
    %55 = vector.load %arg4[%c0_48, %c0_49] : memref<1x128xf32, #tpu.memory_space<vmem>>, vector<1x128xf32>
    %56 = vector.broadcast %55 : vector<1x128xf32> to vector<286x128xf32>
    %57 = arith.addf %54, %56 : vector<286x128xf32>
    %cst_50 = arith.constant 0.000000e+00 : f32
    %58 = vector.broadcast %cst_50 : f32 to vector<286x128xf32>
    %59 = arith.maximumf %57, %58 : vector<286x128xf32>
    %c0_51 = arith.constant 0 : index
    %c0_52 = arith.constant 0 : index
    %60 = vector.load %arg2[%c0_51, %c0_52] : memref<1x286xbf16, #tpu.memory_space<vmem>>, vector<1x286xbf16>
    %61 = arith.truncf %59 : vector<286x128xf32> to vector<286x128xbf16>
    %cst_53 = arith.constant dense<0.000000e+00> : vector<1x128xf32>
    %62 = tpu.matmul %60, %61, %cst_53 {dimension_numbers = #tpu.dot_dimension_numbers<[1], [0], [0], [1], [0, 0, 1, 1], [], []>} : vector<1x286xbf16>, vector<286x128xbf16>, vector<1x128xf32> -> vector<1x128xf32>
    %cst_54 = arith.constant 3.906250e-03 : f32
    %63 = vector.broadcast %cst_54 : f32 to vector<1x128xf32>
    %64 = arith.mulf %62, %63 : vector<1x128xf32>
    %c0_55 = arith.constant 0 : index
    %c0_56 = arith.constant 0 : index
    %65 = vector.load %arg5[%c0_55, %c0_56] : memref<128x128xf32, #tpu.memory_space<vmem>>, vector<128x128xf32>
    %cst_57 = arith.constant dense<0.000000e+00> : vector<1x128xf32>
    %66 = tpu.matmul %64, %65, %cst_57 {dimension_numbers = #tpu.dot_dimension_numbers<[1], [0], [0], [1], [0, 0, 1, 1], [], []>} : vector<1x128xf32>, vector<128x128xf32>, vector<1x128xf32> -> vector<1x128xf32>
    %c0_58 = arith.constant 0 : index
    %c0_59 = arith.constant 0 : index
    %67 = vector.load %arg6[%c0_58, %c0_59] : memref<1x128xf32, #tpu.memory_space<vmem>>, vector<1x128xf32>
    %68 = arith.addf %66, %67 : vector<1x128xf32>
    %c0_60 = arith.constant 0 : index
    %c0_61 = arith.constant 0 : index
    %c0_62 = arith.constant 0 : index
    %69 = vector.load %arg7[%c0_60, %c0_61, %c0_62] : memref<1x1x128xf32, #tpu.memory_space<vmem>>, vector<1x1x128xf32>
    %70 = vector.shape_cast %69 : vector<1x1x128xf32> to vector<1x128xf32>
    %71 = vector.shape_cast %68 : vector<1x128xf32> to vector<1x1x128xf32>
    tpu.vector_store %arg7[%c0_60, %c0_61, %c0_62], %71 {strides = array<i32>} : memref<1x1x128xf32, #tpu.memory_space<vmem>>, vector<1x1x128xf32>,
    return
  }
  func.func @transform_0(%arg0: i32) -> (i32, i32, i32) {
    %c0_i32 = arith.constant 0 : i32
    %c0_i32_0 = arith.constant 0 : i32
    %c0_i32_1 = arith.constant 0 : i32
    return %arg0, %c0_i32, %c0_i32_0 : i32, i32, i32
  }
  func.func @transform_1(%arg0: i32) -> (i32, i32) {
    %c0_i32 = arith.constant 0 : i32
    %c0_i32_0 = arith.constant 0 : i32
    %c0_i32_1 = arith.constant 0 : i32
    return %c0_i32, %c0_i32_0 : i32, i32
  }
  func.func @transform_2(%arg0: i32) -> (i32, i32, i32) {
    %c0_i32 = arith.constant 0 : i32
    %c0_i32_0 = arith.constant 0 : i32
    %c0_i32_1 = arith.constant 0 : i32
    %c0_i32_2 = arith.constant 0 : i32
    return %c0_i32, %c0_i32_0, %c0_i32_1 : i32, i32, i32
  }
  func.func @transform_3(%arg0: i32) -> (i32, i32) {
    %c0_i32 = arith.constant 0 : i32
    %c0_i32_0 = arith.constant 0 : i32
    %c0_i32_1 = arith.constant 0 : i32
    return %c0_i32, %c0_i32_0 : i32, i32
  }
  func.func @transform_4(%arg0: i32) -> (i32, i32) {
    %c0_i32 = arith.constant 0 : i32
    %c0_i32_0 = arith.constant 0 : i32
    %c0_i32_1 = arith.constant 0 : i32
    return %c0_i32, %c0_i32_0 : i32, i32
  }
  func.func @transform_5(%arg0: i32) -> (i32, i32) {
    %c0_i32 = arith.constant 0 : i32
    %c0_i32_0 = arith.constant 0 : i32
    %c0_i32_1 = arith.constant 0 : i32
    return %c0_i32, %c0_i32_0 : i32, i32
  }
  func.func @transform_6(%arg0: i32) -> (i32, i32, i32) {
    %c0_i32 = arith.constant 0 : i32
    %c0_i32_0 = arith.constant 0 : i32
    %c0_i32_1 = arith.constant 0 : i32
    return %arg0, %c0_i32, %c0_i32_0 : i32, i32, i32
  }
}

</mosaic_0001>

<bundles_post_ra>
// kernel: _distill_forward_core.1
= control target key start
LH: loop header
LB: loop body
LE: loop exit
PB: predicated region body
PF: predicated region fallthrough
CT: control target
= control target key end

     0   :  { %s5162_s21 = smov 0   ;;  %s6659_s0 = inlined_call_operand.vmem [shape: bf16[2,324,4], index: 0, kind: input, shape index: {}]   ;;  %s6660_s1 = inlined_call_operand.vmem [shape: bf16[1,286], index: 1, kind: input, shape index: {}]   ;;  %s6661_s2 = inlined_call_operand.vmem [shape: bf16[9,4,128], index: 2, kind: input, shape index: {}]   ;;  %s6662_s3 = inlined_call_operand.vmem [shape: f32[1,128], index: 3, kind: input, shape index: {}]   ;;  %s6663_s4 = inlined_call_operand.vmem [shape: f32[128,128], index: 4, kind: input, shape index: {}]   ;;  %s6664_s5 = inlined_call_operand.vmem [shape: f32[1,128], index: 5, kind: input, shape index: {}]   ;;  %s6665_s6 = inlined_call_operand.vmem [shape: f32[2,1,128], index: 6, kind: output, shape index: {}]  }
   0x1 LB: > { %s4155_s22 = sadd.s32 4294967295, %s5122_s21   ;;  %p4159_p0 = scmp.ge.s32.totalorder %s5122_s21, 1  ;;  %s5122_s21 = sphi %s5162_s21, %s16_s21  }
   0x2   : > { %p212_p1 = scmp.lt.s32.totalorder %s5122_s21, 3 }
   0x4   : > { %p213_p2 = pnand %p4159_p0, %p212_p1 }
   0x6   : > { %216 = sbr.rel (%p213_p2) target bundleno = 1002 (0x3ea), region = 44 }
   0xb   : > { %v4161_v0 = vld [vmem:[%s6661_s2 + $0x2] sm:$0x3]  ;;  %vm578_vm0 = vcmask 1041408   ;;  %p240_p3 = scmp.lt.s32.totalorder %s4155_s22, 1  ;;  %v285_v2 = vld [vmem:[%s6661_s2] sm:$0x3] }
   0xc   : > { %5015 = vmatprep.subr.msk.bf16.mxu0 %vm578_vm0, %v4161_v0  ;;  %5016 = vmatprep.subr.msk.bf16.mxu1 %vm578_vm0, %v4161_v0  ;;  %v580_v1 = vsel %vm578_vm0, %v4161_v0, 0  ;;  %v4217_v3 = vld [vmem:[%s6661_s2 + $0x4] sm:$0x3]  ;;  %vm379_vm1 = vsmask.f32 7424  ;;  %vm523_vm2 = vcmask 31744  }
   0xd   : > { %4629 = vmatpush3.bf16.msra.mxu0 %v580_v1  ;;  %5014 = vmatpush3.bf16.msra.mxu1 %v580_v1  ;;  %s6710_s22 = smov (!%p240_p3, %s4155_s22), 1  ;;  %v1076_v8 = vsel %vm578_vm0, %v4217_v3, 0  ;;  %v4237_v44 = vld [vmem:[%s6661_s2 + $0x6] sm:$0x3]  ;;  %v800_v46 = vsel %vm578_vm0, %v285_v2, 0  ;;  %vm985_vm3 = vcmask 1046528  }
   0xe   : > { %5017 = vmatprep.subr.msk.bf16.mxu1 %vm578_vm0, %v285_v2  ;;  %5018 = vmatprep.subr.msk.bf16.mxu0 %vm578_vm0, %v4217_v3  ;;  %s5025_s29 = smul.u32 164, %s6710_s22  ;;  %v5256_v52 = vld [vmem:[%s6661_s2 + $0x8] sm:$0x3]  ;;  %v1509_v62 = vsel %vm578_vm0, %v4237_v44, 0  ;;  %vm1856_vm4 = vsmask.f32 6400  ;;  %s247_s17 = scalar_lea.vmem %s6665_s6, %s6710_s22 }
   0xf   : > { %vm2299_vm5 = vcmask 1045504   ;;  %vm3052_vm6 = vsmask.f32 5376  ;;  %vm3499_vm7 = vcmask 1044480   ;;  %vm5126_vm8 = vmmov 0  }
  0x10   : > { %s5190_s8 = scalar_lea.vmem %s6659_s0, %s5025_s29  ;;  %vm3931_vm9 = vcmask 244736  }
  0x11   : > { %v249_v4 = vld [vmem:[%s5190_s8] sm:$0xf]  ;;  %v5194_v5 = vld [vmem:[%s5190_s8 + $0x4] sm:$0xf]  ;;  %v5198_v7 = vld [vmem:[%s5190_s8 + $0x8] sm:$0xff]  }
  0x12   : > { %v4162_v6 = vcombine.low %v249_v4, %v5194_v5  ;;  %v5202_v9 = vld [vmem:[%s5190_s8 + $0x88] sm:$0xf]  ;;  %v286_v10 = vld [vmem:[%s5190_s8 + $0x8c] sm:$0xf]  ;;  %v388_v13 = vshll.u32 %v5198_v7, 16  ;;  %v392_v14 = vshrl.u32 %v5198_v7, 16 }
  0x13   : > { %v5208_v15 = vld [vmem:[%s5190_s8 + $0x80] sm:$0xff]   ;;  %v5211_v16 = vld [vmem:[%s5190_s8 + $0x10] sm:$0xff]   ;;  %v5214_v17 = vcombine.low %v5202_v9, %v286_v10  ;;  %v5222_v25 = vld [vmem:[%s5190_s8 + $0x18] sm:$0xff]  }
  0x14   : > { %v381_v11 = vshrl.u32 %v4162_v6, 16  ;;  %v383_v12 = vshll.u32 %v4162_v6, 16  ;;  %v390_v19 = vrot.slane %v388_v13, 1  ;;  %v508_v20 = vshll.u32 %v5208_v15, 16  ;;  %v5226_v27 = vld [vmem:[%s5190_s8 + $0x20] sm:$0xff]   ;;  %v5231_v31 = vld [vmem:[%s5190_s8 + $0x28] sm:$0xff]  }
  0x15   : > { %v512_v21 = vshrl.u32 %v5208_v15, 16  ;;  %v516_v22 = vshll.u32 %v5214_v17, 16  ;;  %v520_v23 = vshrl.u32 %v5214_v17, 16  ;;  %v396_v24 = vshll.u32 %v5211_v16, 16  ;;  %v5249_v49 = vld [vmem:[%s5190_s8 + $0x30] sm:$0xff]   ;;  %v5261_v55 = vld [vmem:[%s5190_s8 + $0x38] sm:$0xff]  }
  0x16   : > { %v385_v18 = vrot.slane %v383_v12, 1  ;;  %v400_v26 = vshrl.u32 %v5211_v16, 16  ;;  %v394_v29 = vor.u32 %v392_v14, %v390_v19  ;;  %v5228_v30 = vrot.slane %v508_v20, 1  ;;  %v5276_v0 = vld [vmem:[%s5190_s8 + $0x40] sm:$0xff]   ;;  %v5282_v4 = vld [vmem:[%s5190_s8 + $0x48] sm:$0xff]   ;;  %v5296_v20 = vld [vmem:[%s5190_s8 + $0x50] sm:$0xff]  }
  0x17   : > { %v518_v32 = vrot.slane %v516_v22, 1  ;;  %v398_v33 = vrot.slane %v396_v24, 1  ;;  %v404_v34 = vshll.u32 %v5222_v25, 16  ;;  %v408_v35 = vshrl.u32 %v5222_v25, 16 }
  0x18   : > { %v386_v28 = vor.u32 %v385_v18, %v381_v11  ;;  %v514_v37 = vor.u32 %v512_v21, %v5228_v30  ;;  %v412_v38 = vshll.u32 %v5226_v27, 16  ;;  %v416_v39 = vshrl.u32 %v5226_v27, 16 }
  0x19   : > { %v522_v40 = vor.u32 %v520_v23, %v518_v32  ;;  %v399_v41 = vsel %vm379_vm1, %v394_v29, %v398_v33  ;;  %v402_v42 = vor.u32 %v400_v26, %v398_v33  ;;  %v406_v43 = vrot.slane %v404_v34, 1 }
  0x1a   : > { %v391_v36 = vsel %vm379_vm1, %v386_v28, %v390_v19  ;;  %v519_v45 = vsel %vm379_vm1, %v514_v37, %v518_v32  ;;  %v414_v47 = vrot.slane %v412_v38, 1  ;;  %v420_v48 = vshll.u32 %v5231_v31, 16  ;;  %v5308_v28 = vld [vmem:[%s5190_s8 + $0x58] sm:$0xff]   ;;  %v5326_v38 = vld [vmem:[%s5190_s8 + $0x60] sm:$0xff]  }
  0x1b   : > { %4630 = vmatprep.mubr.msk.bf16.mxu0 %vm523_vm2, %v391_v36  ;;  %4662 = vmatprep.mubr.msk.bf16.mxu1 %vm523_vm2, %v519_v45  ;;  %v407_v50 = vsel %vm379_vm1, %v402_v42, %v406_v43  ;;  %v410_v51 = vor.u32 %v408_v35, %v406_v43  ;;  %v428_v56 = vshll.u32 %v5249_v49, 16  ;;  %v424_v58 = vshrl.u32 %v5231_v31, 16  ;;  %v5339_v45 = vld [vmem:[%s5190_s8 + $0x68] sm:$0xff]  }
  0x1c   : > { %4631 = vmatmul.mubr.msk.bf16.vlgmr.msra.gmra.mxu0 %vm523_vm2, %v399_v41  ;;  %4663 = vmatmul.mubr.msk.bf16.vlgmr.msra.gmra.mxu1 %vm523_vm2, %v522_v40  ;;  %v418_v53 = vor.u32 %v416_v39, %v414_v47  ;;  %v422_v54 = vrot.slane %v420_v48, 1  ;;  %v432_v60 = vshrl.u32 %v5249_v49, 16  ;;  %v436_v61 = vshll.u32 %v5261_v55, 16 }
  0x1d   : > { %4705 = vmatpush3.bf16.msra.mxu0 %v1076_v8  ;;  %4634 = vmatprep.mubr.msk.bf16.mxu0 %vm523_vm2, %v407_v50  ;;  %v415_v57 = vsel %vm379_vm1, %v410_v51, %v414_v47  ;;  %v430_v63 = vrot.slane %v428_v56, 1  ;;  %v440_v10 = vshrl.u32 %v5261_v55, 16  ;;  %v448_v12 = vshrl.u32 %v5276_v0, 16  ;;  %v5347_v50 = vld [vmem:[%s5190_s8 + $0x70] sm:$0xff]   ;;  %v5350_v51 = vld [vmem:[%s5190_s8 + $0x78] sm:$0xff]  }
  0x1e   : > { %4667 = vmatpush3.bf16.msra.mxu1 %v800_v46  ;;  %4668 = vmatprep.mubr.msk.bf16.mxu1 %vm523_vm2, %v4162_v6  ;;  %v423_v59 = vsel %vm379_vm1, %v418_v53, %v422_v54  ;;  %v426_v1 = vor.u32 %v424_v58, %v422_v54  ;;  %v438_v3 = vrot.slane %v436_v61, 1  ;;  %v444_v6 = vshll.u32 %v5276_v0, 16 }
  0x1f   : > { %5019 = vmatprep.subr.msk.bf16.mxu1 %vm578_vm0, %v4237_v44  ;;  %5020 = vmatprep.subr.msk.bf16.mxu0 %vm578_vm0, %v5256_v52  ;;  %v434_v2 = vor.u32 %v432_v60, %v430_v63  ;;  %v452_v13 = vshll.u32 %v5282_v4, 16  ;;  %v989_v14 = vrot.slane %v5211_v16, 1  ;;  %v991_v18 = vrot.slane %v5222_v25, 1 }
  0x20   : > { %v431_v8 = vsel %vm379_vm1, %v426_v1, %v430_v63  ;;  %v446_v19 = vrot.slane %v444_v6, 1  ;;  %v442_v21 = vor.u32 %v440_v10, %v438_v3  ;;  %v993_v23 = vrot.slane %v5226_v27, 1 }
  0x21   : > { %v439_v11 = vsel %vm379_vm1, %v434_v2, %v438_v3  ;;  %v5302_v22 = vsel %vm985_vm3, %v989_v14, %v991_v18  ;;  %v454_v26 = vrot.slane %v452_v13, 1  ;;  %v995_v29 = vrot.slane %v5231_v31, 1 }
  0x22   : > { %v450_v24 = vor.u32 %v448_v12, %v446_v19  ;;  %v456_v32 = vshrl.u32 %v5282_v4, 16  ;;  %v5315_v33 = vsel %vm985_vm3, %v991_v18, %v993_v23  ;;  %v997_v34 = vrot.slane %v5249_v49, 1 }
  0x23   : > { %v460_v35 = vshll.u32 %v5296_v20, 16  ;;  %v999_v36 = vrot.slane %v5261_v55, 1  ;;  %v447_v37 = vsel %vm379_vm1, %v442_v21, %v446_v19  ;;  %v1001_v40 = vrot.slane %v5276_v0, 1 }
  0x24   : > { %4635 = vmatmul.mubr.msk.bf16.gmra.mxu0 %vm523_vm2, %v415_v57  ;;  %4669 = vmatmul.mubr.msk.bf16.vlgmr.msra.gmra.mxu1 %vm523_vm2, %v5198_v7  ;;  %v5329_v39 = vsel %vm985_vm3, %v995_v29, %v997_v34  ;;  %v455_v41 = vsel %vm379_vm1, %v450_v24, %v454_v26  ;;  %v468_v42 = vshll.u32 %v5308_v28, 16  ;;  %v1003_v44 = vrot.slane %v5282_v4, 1 }
  0x25   : > { %4638 = vmatprep.mubr.msk.bf16.mxu0 %vm523_vm2, %v423_v59  ;;  %4672 = vmatprep.mubr.msk.bf16.mxu1 %vm523_vm2, %v5211_v16  ;;  %v5335_v43 = vsel %vm985_vm3, %v997_v34, %v999_v36  ;;  %v5342_v46 = vsel %vm985_vm3, %v999_v36, %v1001_v40  ;;  %v1005_v47 = vrot.slane %v5296_v20, 1  ;;  %v462_v48 = vrot.slane %v460_v35, 1  ;;  %v284_v16 = vld [vmem:[%s5190_s8 + $0x8c] sm:$0x7] }
  0x26   : > { %4743 = vmatpush3.bf16.msra.mxu1 %v1509_v62  ;;  %v5353_v53 = vsel %vm985_vm3, %v1001_v40, %v1003_v44  ;;  %v1007_v54 = vrot.slane %v5308_v28, 1  ;;  %v458_v56 = vor.u32 %v456_v32, %v454_v26  ;;  %v1009_v58 = vrot.slane %v5326_v38, 1  ;;  %v979_v40 = vld [vmem:[%s5190_s8] sm:$0xe] }
  0x27   : > { %v5358_v57 = vsel %vm985_vm3, %v1003_v44, %v1005_v47  ;;  %v1011_v59 = vrot.slane %v5339_v45, 1  ;;  %v470_v61 = vrot.slane %v468_v42, 1  ;;  %v472_v62 = vshrl.u32 %v5308_v28, 16 }
  0x28   : > { %v5366_v63 = vsel %vm985_vm3, %v1005_v47, %v1007_v54  ;;  %v5371_v1 = vsel %vm985_vm3, %v1007_v54, %v1009_v58  ;;  %v1013_v3 = vrot.slane %v5347_v50, 1  ;;  %v476_v6 = vshll.u32 %v5326_v38, 16 }
  0x29   : > { %v5374_v2 = vsel %vm985_vm3, %v1009_v58, %v1011_v59  ;;  %v463_v10 = vsel %vm379_vm1, %v458_v56, %v462_v48  ;;  %v474_v19 = vor.u32 %v472_v62, %v470_v61  ;;  %v492_v24 = vshll.u32 %v5347_v50, 16  ;;  %v5062_v62 = vld [vmem:[%s5190_s8 + $0x30] sm:$0xff]  }
  0x2a   : > { %v478_v18 = vrot.slane %v476_v6, 1  ;;  %v496_v34 = vshrl.u32 %v5347_v50, 16  ;;  %v500_v35 = vshll.u32 %v5350_v51, 16  ;;  %v504_v42 = vshrl.u32 %v5350_v51, 16 }
  0x2b   : > { %v4218_v47 = vcombine.low %v979_v40, %v5194_v5  ;;  %v4198_v56 = vcombine.low %v5202_v9, %v284_v16  ;;  %v5061_v9 = vld [vmem:[%s5190_s8 + $0x28] sm:$0xff]   ;;  %v1428_v6 = vrot.slane %v5062_v62, 1  ;;  %v1017_v40 = vrot.slane %v5208_v15, 1 }
  0x2c   : > { %4639 = vmatmul.mubr.msk.bf16.gmra.mxu0 %vm523_vm2, %v431_v8  ;;  %4673 = vmatmul.mubr.msk.bf16.gmra.mxu1 %vm523_vm2, %v5222_v25  ;;  %v5320_v25 = vsel %vm985_vm3, %v993_v23, %v995_v29  ;;  %v480_v8 = vshrl.u32 %v5326_v38, 16  ;;  %v479_v26 = vsel %vm379_vm1, %v474_v19, %v478_v18  ;;  %v488_v29 = vshrl.u32 %v5339_v45, 16  ;;  %v5065_v19 = vld [vmem:[%s5190_s8 + $0x48] sm:$0xff]  }
  0x2d   : > { %4642 = vmatprep.mubr.msk.bf16.mxu0 %vm523_vm2, %v439_v11  ;;  %4676 = vmatprep.mubr.msk.bf16.mxu1 %vm523_vm2, %v5226_v27  ;;  %v464_v27 = vshrl.u32 %v5296_v20, 16  ;;  %v484_v11 = vshll.u32 %v5339_v45, 16 }
  0x2e   : > { %v482_v21 = vor.u32 %v480_v8, %v478_v18  ;;  %v5490_v18 = vld [vmem:[%s6661_s2 + $0xe] sm:$0x3] }
  0x2f   : > { %v466_v60 = vor.u32 %v464_v27, %v462_v48  ;;  %v486_v23 = vrot.slane %v484_v11, 1  ;;  %v502_v27 = vrot.slane %v500_v35, 1  ;;  %v987_v48 = vrot.slane %v5198_v7, 1  ;;  %v5064_v11 = vld [vmem:[%s5190_s8 + $0x40] sm:$0xff]   ;;  %v5516_v35 = vld [vmem:[%s5190_s8 + $0xc] sm:$0xf] }
  0x31   : > { %v471_v13 = vsel %vm379_vm1, %v466_v60, %v470_v61  ;;  %v487_v32 = vsel %vm379_vm1, %v482_v21, %v486_v23  ;;  %v490_v36 = vor.u32 %v488_v29, %v486_v23  ;;  %v990_v7 = vsel %vm985_vm3, %v987_v48, %v989_v14  ;;  %v5066_v21 = vld [vmem:[%s5190_s8 + $0x50] sm:$0xff]   ;;  %v5067_v29 = vld [vmem:[%s5190_s8 + $0x58] sm:$0xff]  }
  0x32   : > { %v1434_v23 = vrot.slane %v5065_v19, 1 }
  0x34   : > { %4643 = vmatmul.mubr.msk.bf16.gmra.mxu0 %vm523_vm2, %v447_v37  ;;  %4677 = vmatmul.mubr.msk.bf16.gmra.mxu1 %vm523_vm2, %v5231_v31  ;;  %v1015_v31 = vrot.slane %v5350_v51, 1 }
  0x35   : > { %4646 = vmatprep.mubr.msk.bf16.mxu0 %vm523_vm2, %v455_v41  ;;  %4680 = vmatprep.mubr.msk.bf16.mxu1 %vm523_vm2, %v5249_v49  ;;  %v5383_v49 = vsel %vm985_vm3, %v1011_v59, %v1013_v3  ;;  %v5060_v59 = vld [vmem:[%s5190_s8 + $0x20] sm:$0xff]  }
  0x36   : > { %v5388_v12 = vsel %vm985_vm3, %v1013_v3, %v1015_v31  ;;  %v1424_v60 = vrot.slane %v5060_v59, 1 }
  0x3c   : > { %4647 = vmatmul.mubr.msk.bf16.gmra.mxu0 %vm523_vm2, %v463_v10  ;;  %4681 = vmatmul.mubr.msk.bf16.gmra.mxu1 %vm523_vm2, %v5261_v55  ;;  %v494_v55 = vrot.slane %v492_v24, 1  ;;  %v1436_v24 = vrot.slane %v5066_v21, 1 }
  0x3d   : > { %4650 = vmatprep.mubr.msk.bf16.mxu0 %vm523_vm2, %v471_v13  ;;  %4684 = vmatprep.mubr.msk.bf16.mxu1 %vm523_vm2, %v5276_v0  ;;  %v4312_v0 = vld [vmem:[%s6661_s2 + $0xa] sm:$0x3]  ;;  %v1432_v13 = vrot.slane %v5064_v11, 1 }
  0x3e   : > { %v498_v37 = vor.u32 %v496_v34, %v494_v55  ;;  %5021 = vmatprep.subr.msk.bf16.mxu1 %vm578_vm0, %v4312_v0  ;;  %v495_v41 = vsel %vm379_vm1, %v490_v36, %v494_v55  ;;  %v2392_v3 = vsel %vm578_vm0, %v4312_v0, 0  ;;  %v1724_v34 = vld [vmem:[%s5190_s8 + $0x8] sm:$0xe]  ;;  %v5520_v0 = vld [vmem:[%s5190_s8 + $0x10] sm:$0xff]  }
  0x3f   : > { %v4275_v36 = vcombine.low %v1724_v34, %v5516_v35 }
  0x40   : > { %v503_v44 = vsel %vm379_vm1, %v498_v37, %v502_v27  ;;  %v5069_v37 = vld [vmem:[%s5190_s8 + $0x68] sm:$0xff]  }
  0x44   : > { %4651 = vmatmul.mubr.msk.bf16.gmra.mxu0 %vm523_vm2, %v479_v26  ;;  %4685 = vmatmul.mubr.msk.bf16.gmra.mxu1 %vm523_vm2, %v5282_v4  ;;  %v506_v4 = vor.u32 %v504_v42, %v502_v27  ;;  %v1435_v26 = vsel %vm985_vm3, %v1432_v13, %v1434_v23  ;;  %v5070_v27 = vld [vmem:[%s5190_s8 + $0x70] sm:$0xff]   ;;  %v1858_v42 = vshrl.u32 %v4275_v36, 16 }
  0x45   : > { %4654 = vmatprep.mubr.msk.bf16.mxu0 %vm523_vm2, %v487_v32  ;;  %4688 = vmatprep.mubr.msk.bf16.mxu1 %vm523_vm2, %v5296_v20  ;;  %v986_v20 = vrot.slane %v4218_v47, 1  ;;  %v5068_v32 = vld [vmem:[%s5190_s8 + $0x60] sm:$0xff]   ;;  %v1866_v47 = vshrl.u32 %v5520_v0, 16 }
  0x46   : > { %v511_v54 = vsel %vm379_vm1, %v506_v4, %v5228_v30  ;;  %v2078_v30 = vsel %vm578_vm0, %v5256_v52, 0  ;;  %v1440_v55 = vrot.slane %v5068_v32, 1  ;;  %v1442_v4 = vrot.slane %v5069_v37, 1  ;;  %v5580_v32 = vld [vmem:[%s5190_s8 + $0x38] sm:$0xff]  }
  0x47   : > { %v988_v5 = vsel %vm985_vm3, %v986_v20, %v987_v48  ;;  %v1444_v20 = vrot.slane %v5070_v27, 1  ;;  %v1860_v48 = vrot.slane %v1858_v42, 1  ;;  %v1911_v42 = vshrl.u32 %v5580_v32, 16 }
  0x49   : > { %v1445_v16 = vsel %vm985_vm3, %v1442_v4, %v1444_v20 }
  0x4c   : > { %4655 = vmatmul.mubr.msk.bf16.gmra.mxu0 %vm523_vm2, %v495_v41  ;;  %4689 = vmatmul.mubr.msk.bf16.gmra.mxu1 %vm523_vm2, %v5308_v28  ;;  %v5442_v28 = vld [vmem:[%s6661_s2 + $0xc] sm:$0x3]  ;;  %v1019_v41 = vrot.slane %v5214_v17, 1 }
  0x4d   : > { %4658 = vmatprep.mubr.msk.bf16.mxu0 %vm523_vm2, %v503_v44  ;;  %4692 = vmatprep.mubr.msk.bf16.mxu1 %vm523_vm2, %v5326_v38  ;;  %v5057_v38 = vld [vmem:[%s5190_s8 + $0x8] sm:$0xfe]   ;;  %v1861_v44 = vshll.u32 %v4275_v36, 16  ;;  %v5584_v36 = vld [vmem:[%s5190_s8 + $0x40] sm:$0xff]  }
  0x4e   : > { %v1419_v52 = vrot.slane %v5057_v38, 1  ;;  %v1020_v17 = vsel %vm985_vm3, %v1017_v40, %v1019_v41  ;;  %v1443_v38 = vsel %vm985_vm3, %v1440_v55, %v1442_v4  ;;  %v2301_v4 = vrot.slane %v5520_v0, 2 }
  0x54   : > { %4659 = vmatmul.mubr.msk.bf16.gmra.mxu0 %vm523_vm2, %v511_v54  ;;  %4693 = vmatmul.mubr.msk.bf16.gmra.mxu1 %vm523_vm2, %v5339_v45  ;;  %v5058_v45 = vld [vmem:[%s5190_s8 + $0x10] sm:$0xff]   ;;  %v1863_v54 = vrot.slane %v1861_v44, 2 }
  0x55   : > { %4706 = vmatprep.mubr.msk.bf16.mxu0 %vm523_vm2, %v988_v5  ;;  %4696 = vmatprep.mubr.msk.bf16.mxu1 %vm523_vm2, %v5347_v50  ;;  %v1420_v14 = vrot.slane %v5058_v45, 1  ;;  %v5059_v50 = vld [vmem:[%s5190_s8 + $0x18] sm:$0xff]   ;;  %v1868_v5 = vrot.slane %v1866_v47, 1  ;;  %v1920_v47 = vshrl.u32 %v5584_v36, 16 }
  0x56   : > { %v1422_v58 = vrot.slane %v5059_v50, 1  ;;  %v5071_v45 = vld [vmem:[%s5190_s8 + $0x78] sm:$0xff]  }
  0x58   : > { %v1423_v61 = vsel %vm985_vm3, %v1420_v14, %v1422_v58 }
  0x5c   : > { %4707 = vmatmul.mubr.msk.bf16.vlgmr.msra.gmra.mxu0 %vm523_vm2, %v990_v7  ;;  %4697 = vmatmul.mubr.msk.bf16.gmra.mxu1 %vm523_vm2, %v5350_v51  ;;  %v5072_v51 = vld [vmem:[%s5190_s8 + $0x80] sm:$0xff]  }
  0x5d   : > { %4710 = vmatprep.mubr.msk.bf16.mxu0 %vm523_vm2, %v5302_v22  ;;  %4781 = vmatpush3.bf16.msra.mxu0 %v2078_v30  ;;  %v1421_v22 = vsel %vm985_vm3, %v1419_v52, %v1420_v14  ;;  %v5544_v30 = vld [vmem:[%s5190_s8 + $0x20] sm:$0xff]   ;;  %v1864_v14 = vor.u32 %v1863_v54, %v1860_v48  ;;  %v1448_v59 = vrot.slane %v5072_v51, 1  ;;  %v5609_v48 = vld [vmem:[%s5190_s8 + $0x48] sm:$0xff]  }
  0x5e   : > { %5022 = vmatprep.subr.msk.bf16.mxu0 %vm578_vm0, %v5442_v28  ;;  %4700 = vmatprep.mubr.msk.bf16.mxu1 %vm523_vm2, %v5208_v15  ;;  %v1018_v15 = vsel %vm985_vm3, %v1015_v31, %v1017_v40  ;;  %v1932_v51 = vshll.u32 %v5609_v48, 16 }
  0x64   : > { %4711 = vmatmul.mubr.msk.bf16.gmra.mxu0 %vm523_vm2, %v5315_v33  ;;  %4701 = vmatmul.mubr.msk.bf16.gmra.mxu1 %vm523_vm2, %v4198_v56  ;;  %v1425_v33 = vsel %vm985_vm3, %v1422_v58, %v1424_v60  ;;  %v1884_v56 = vshrl.u32 %v5544_v30, 16  ;;  %v1446_v58 = vrot.slane %v5071_v45, 1 }
  0x65   : > { %4714 = vmatprep.mubr.msk.bf16.mxu0 %vm523_vm2, %v5320_v25  ;;  %4744 = vmatprep.mubr.msk.bf16.mxu1 %vm523_vm2, %v1421_v22  ;;  %v1426_v25 = vrot.slane %v5061_v9, 1  ;;  %v1887_v22 = vshll.u32 %v5544_v30, 16  ;;  %v5559_v9 = vld [vmem:[%s5190_s8 + $0x28] sm:$0xff]  }
  0x66   : > { %v1886_v62 = vrot.slane %v1884_v56, 1  ;;  %v2305_v56 = vrot.slane %v5544_v30, 2  ;;  %v3278_v30 = vsel %vm578_vm0, %v5490_v18, 0 }
  0x67   : > { %v1427_v8 = vsel %vm985_vm3, %v1424_v60, %v1426_v25  ;;  %v1429_v10 = vsel %vm985_vm3, %v1426_v25, %v1428_v6  ;;  %v5563_v25 = vld [vmem:[%s5190_s8 + $0x30] sm:$0xff]  }
  0x68   : > { %v1902_v19 = vshrl.u32 %v5563_v25, 16 }
  0x6a   : > { %v1904_v34 = vrot.slane %v1902_v19, 1 }
  0x6c   : > { %4715 = vmatmul.mubr.msk.bf16.gmra.mxu0 %vm523_vm2, %v5329_v39  ;;  %4745 = vmatmul.mubr.msk.bf16.vlgmr.msra.gmra.mxu1 %vm523_vm2, %v1423_v61  ;;  %v5063_v39 = vld [vmem:[%s5190_s8 + $0x38] sm:$0xff]  }
  0x6d   : > { %4718 = vmatprep.mubr.msk.bf16.mxu0 %vm523_vm2, %v5335_v43  ;;  %4748 = vmatprep.mubr.msk.bf16.mxu1 %vm523_vm2, %v1425_v33  ;;  %v1430_v43 = vrot.slane %v5063_v39, 1  ;;  %v1449_v39 = vsel %vm985_vm3, %v1446_v58, %v1448_v59 }
  0x6e   : > { %4819 = vmatpush3.bf16.msra.mxu1 %v2392_v3  ;;  %v1889_v3 = vrot.slane %v1887_v22, 2 }
  0x6f   : > { %5023 = vmatprep.subr.msk.bf16.mxu1 %vm578_vm0, %v5490_v18  ;;  %v2307_v18 = vrot.slane %v5559_v9, 2 }
  0x74   : > { %4719 = vmatmul.mubr.msk.bf16.gmra.mxu0 %vm523_vm2, %v5342_v46  ;;  %4749 = vmatmul.mubr.msk.bf16.gmra.mxu1 %vm523_vm2, %v1427_v8  ;;  %v1431_v46 = vsel %vm985_vm3, %v1428_v6, %v1430_v43  ;;  %v1447_v6 = vsel %vm985_vm3, %v1444_v20, %v1446_v58  ;;  %v5075_v8 = vld [vmem:[%s5190_s8 + $0x88] sm:$0xff]  }
  0x75   : > { %4722 = vmatprep.mubr.msk.bf16.mxu0 %vm523_vm2, %v5353_v53  ;;  %4752 = vmatprep.mubr.msk.bf16.mxu1 %vm523_vm2, %v1429_v10  ;;  %v1433_v53 = vsel %vm985_vm3, %v1430_v43, %v1432_v13  ;;  %v5077_v10 = vld [vmem:[%s5190_s8 + $0x90] sm:$0xff]   ;;  %v1893_v43 = vshrl.u32 %v5559_v9, 16  ;;  %v1896_v13 = vshll.u32 %v5559_v9, 16  ;;  %v1450_v21 = vrot.slane %v5075_v8, 1 }
  0x77   : > { %v1451_v37 = vsel %vm985_vm3, %v1448_v59, %v1450_v21  ;;  %v1934_v59 = vrot.slane %v1932_v51, 2 }
  0x7c   : > { %4723 = vmatmul.mubr.msk.bf16.gmra.mxu0 %vm523_vm2, %v5358_v57  ;;  %4753 = vmatmul.mubr.msk.bf16.gmra.mxu1 %vm523_vm2, %v1431_v46  ;;  %v1437_v57 = vsel %vm985_vm3, %v1434_v23, %v1436_v24  ;;  %v1890_v46 = vor.u32 %v1889_v3, %v1886_v62  ;;  %v1452_v23 = vrot.slane %v5077_v10, 1  ;;  %v5632_v3 = vld [vmem:[%s5190_s8 + $0x60] sm:$0xff]  }
  0x7d   : > { %4726 = vmatprep.mubr.msk.bf16.mxu0 %vm523_vm2, %v5366_v63  ;;  %4756 = vmatprep.mubr.msk.bf16.mxu1 %vm523_vm2, %v1433_v53  ;;  %v1438_v63 = vrot.slane %v5067_v29, 1  ;;  %v1905_v53 = vshll.u32 %v5563_v25, 16  ;;  %v1898_v29 = vrot.slane %v1896_v13, 2  ;;  %v1959_v13 = vshll.u32 %v5632_v3, 16 }
  0x7e   : > { %v1453_v27 = vsel %vm985_vm3, %v1450_v21, %v1452_v23 }
  0x84   : > { %4727 = vmatmul.mubr.msk.bf16.gmra.mxu0 %vm523_vm2, %v5371_v1  ;;  %4757 = vmatmul.mubr.msk.bf16.gmra.mxu1 %vm523_vm2, %v1435_v26  ;;  %v1439_v1 = vsel %vm985_vm3, %v1436_v24, %v1438_v63  ;;  %v1895_v26 = vrot.slane %v1893_v43, 1  ;;  %v1956_v43 = vshrl.u32 %v5632_v3, 16 }
  0x85   : > { %4730 = vmatprep.mubr.msk.bf16.mxu0 %vm523_vm2, %v5374_v2  ;;  %4760 = vmatprep.mubr.msk.bf16.mxu1 %vm523_vm2, %v1437_v57  ;;  %v1441_v2 = vsel %vm985_vm3, %v1438_v63, %v1440_v55  ;;  %v2293_v57 = vld [vmem:[%s5190_s8 + $0x8] sm:$0xc]  ;;  %v1907_v55 = vrot.slane %v1905_v53, 2 }
  0x86   : > { %v4313_v40 = vcombine.low %v2293_v57, %v5516_v35  ;;  %v5654_v57 = vld [vmem:[%s5190_s8 + $0x70] sm:$0xff]  }
  0x87   : > { %v1908_v44 = vor.u32 %v1907_v55, %v1904_v34 }
  0x88   : > { %v2300_v35 = vrot.slane %v4313_v40, 2  ;;  %v2311_v40 = vrot.slane %v5580_v32, 2 }
  0x8a   : > { %v2302_v45 = vsel %vm2299_vm5, %v2300_v35, %v2301_v4 }
  0x8c   : > { %4731 = vmatmul.mubr.msk.bf16.gmra.mxu0 %vm523_vm2, %v5383_v49  ;;  %4761 = vmatmul.mubr.msk.bf16.gmra.mxu1 %vm523_vm2, %v1439_v1  ;;  %v1869_v49 = vshll.u32 %v5520_v0, 16  ;;  %v2831_v1 = vsel %vm578_vm0, %v5442_v28, 0  ;;  %v1914_v28 = vshll.u32 %v5580_v32, 16 }
  0x8d   : > { %4734 = vmatprep.mubr.msk.bf16.mxu0 %vm523_vm2, %v5388_v12  ;;  %4764 = vmatprep.mubr.msk.bf16.mxu1 %vm523_vm2, %v1441_v2  ;;  %v5541_v12 = vld [vmem:[%s5190_s8 + $0x18] sm:$0xff]   ;;  %v5592_v2 = vld [vmem:[%s6661_s2 + $0x10] sm:$0x3] }
  0x8e   : > { %v1871_v7 = vrot.slane %v1869_v49, 2  ;;  %v1875_v31 = vshrl.u32 %v5541_v12, 16  ;;  %v1878_v52 = vshll.u32 %v5541_v12, 16  ;;  %v1923_v49 = vshll.u32 %v5584_v36, 16 }
  0x90   : > { %v1872_v50 = vor.u32 %v1871_v7, %v1868_v5  ;;  %v1877_v60 = vrot.slane %v1875_v31, 1  ;;  %v1880_v61 = vrot.slane %v1878_v52, 2  ;;  %v1922_v5 = vrot.slane %v1920_v47, 1  ;;  %v5670_v47 = vld [vmem:[%s5190_s8 + $0x78] sm:$0xff]  }
  0x91   : > { %v1925_v7 = vrot.slane %v1923_v49, 2 }
  0x92   : > { %v1873_v33 = vsel %vm1856_vm4, %v1864_v14, %v1872_v50  ;;  %v1881_v11 = vor.u32 %v1880_v61, %v1877_v60  ;;  %v5628_v60 = vld [vmem:[%s5190_s8 + $0x58] sm:$0xff]  }
  0x93   : > { %v1926_v31 = vor.u32 %v1925_v7, %v1922_v5  ;;  %v1950_v10 = vshll.u32 %v5628_v60, 16 }
  0x94   : > { %4735 = vmatmul.mubr.msk.bf16.gmra.mxu0 %vm523_vm2, %v1018_v15  ;;  %4765 = vmatmul.mubr.msk.bf16.gmra.mxu1 %vm523_vm2, %v1443_v38  ;;  %v1882_v24 = vsel %vm1856_vm4, %v1872_v50, %v1881_v11  ;;  %v1891_v63 = vsel %vm1856_vm4, %v1881_v11, %v1890_v46  ;;  %v1913_v15 = vrot.slane %v1911_v42, 1  ;;  %v5613_v38 = vld [vmem:[%s5190_s8 + $0x50] sm:$0xff]   ;;  %v2303_v50 = vrot.slane %v5541_v12, 2 }
  0x95   : > { %4738 = vmatprep.mubr.msk.bf16.mxu0 %vm523_vm2, %v1020_v17  ;;  %4768 = vmatprep.mubr.msk.bf16.mxu1 %vm523_vm2, %v1445_v16  ;;  %v1916_v17 = vrot.slane %v1914_v28, 2  ;;  %v1929_v16 = vshrl.u32 %v5609_v48, 16  ;;  %v1938_v52 = vshrl.u32 %v5613_v38, 16  ;;  %v1941_v14 = vshll.u32 %v5613_v38, 16 }
  0x96   : > { %v2306_v12 = vsel %vm2299_vm5, %v2303_v50, %v2305_v56  ;;  %v1952_v21 = vrot.slane %v1950_v10, 2 }
  0x97   : > { %v1917_v0 = vor.u32 %v1916_v17, %v1913_v15  ;;  %v1931_v58 = vrot.slane %v1929_v16, 1  ;;  %v1943_v62 = vrot.slane %v1941_v14, 2  ;;  %v1983_v17 = vshrl.u32 %v5670_v47, 16  ;;  %v5690_v14 = vld [vmem:[%s5190_s8 + $0x88] sm:$0xff]  }
  0x98   : > { %v2317_v16 = vrot.slane %v5613_v38, 2 }
  0x99   : > { %v1918_v22 = vsel %vm1856_vm4, %v1908_v44, %v1917_v0  ;;  %v1927_v61 = vsel %vm1856_vm4, %v1917_v0, %v1926_v31  ;;  %v1935_v8 = vor.u32 %v1934_v59, %v1931_v58  ;;  %v2315_v0 = vrot.slane %v5609_v48, 2  ;;  %v5694_v58 = vld [vmem:[%s5190_s8 + $0x90] sm:$0xff]  }
  0x9b   : > { %v1936_v19 = vsel %vm1856_vm4, %v1926_v31, %v1935_v8  ;;  %v1985_v31 = vrot.slane %v1983_v17, 1  ;;  %v2318_v48 = vsel %vm2299_vm5, %v2315_v0, %v2317_v16 }
  0x9c   : > { %4739 = vmatmul.mubr.msk.bf16.gmra.mxu0 %vm523_vm2, %v1019_v41  ;;  %4769 = vmatmul.mubr.msk.bf16.gmra.mxu1 %vm523_vm2, %v1447_v6  ;;  %v1899_v41 = vor.u32 %v1898_v29, %v1895_v26  ;;  %v2304_v6 = vsel %vm2299_vm5, %v2301_v4, %v2303_v50  ;;  %v1958_v26 = vrot.slane %v1956_v43, 1  ;;  %v1961_v29 = vrot.slane %v1959_v13, 2 }
  0x9d   : > { %4782 = vmatprep.mubr.msk.bf16.mxu0 %vm523_vm2, %v1873_v33  ;;  %4772 = vmatprep.mubr.msk.bf16.mxu1 %vm523_vm2, %v1449_v39  ;;  %v1940_v33 = vrot.slane %v1938_v52, 1  ;;  %v1947_v39 = vshrl.u32 %v5628_v60, 16 }
  0x9e   : > { %v1900_v20 = vsel %vm1856_vm4, %v1890_v46, %v1899_v41  ;;  %v1909_v54 = vsel %vm1856_vm4, %v1899_v41, %v1908_v44  ;;  %v2309_v46 = vrot.slane %v5563_v25, 2  ;;  %v2313_v41 = vrot.slane %v5584_v36, 2 }
  0x9f   : > { %v1944_v11 = vor.u32 %v1943_v62, %v1940_v33  ;;  %v1949_v53 = vrot.slane %v1947_v39, 1  ;;  %v2004_v33 = vshll.u32 %v5690_v14, 16 }
  0xa0   : > { %v2310_v9 = vsel %vm2299_vm5, %v2307_v18, %v2309_v46  ;;  %v2312_v15 = vsel %vm2299_vm5, %v2309_v46, %v2311_v40  ;;  %v2314_v32 = vsel %vm2299_vm5, %v2311_v40, %v2313_v41  ;;  %v2316_v59 = vsel %vm2299_vm5, %v2313_v41, %v2315_v0 }
  0xa1   : > { %v1953_v25 = vor.u32 %v1952_v21, %v1949_v53 }
  0xa3   : > { %v1954_v42 = vsel %vm1856_vm4, %v1944_v11, %v1953_v25 }
  0xa4   : > { %4783 = vmatmul.mubr.msk.bf16.vlgmr.msra.gmra.mxu0 %vm523_vm2, %v1882_v24  ;;  %4773 = vmatmul.mubr.msk.bf16.gmra.mxu1 %vm523_vm2, %v1451_v37  ;;  %v1945_v24 = vsel %vm1856_vm4, %v1935_v8, %v1944_v11  ;;  %v1974_v37 = vshrl.u32 %v5654_v57, 16  ;;  %v2321_v8 = vrot.slane %v5632_v3, 2  ;;  %v2006_v11 = vrot.slane %v2004_v33, 2  ;;  %v5715_v3 = vld [vmem:[%s5190_s8 + $0x98] ss:$0 sps:$4 sm:$0x11]  }
  0xa5   : > { %4786 = vmatprep.mubr.msk.bf16.mxu0 %vm523_vm2, %v1891_v63  ;;  %4857 = vmatpush3.bf16.msra.mxu0 %v2831_v1  ;;  %v2308_v63 = vsel %vm2299_vm5, %v2305_v56, %v2307_v18  ;;  %v1962_v1 = vor.u32 %v1961_v29, %v1958_v26  ;;  %v5722_v26 = vld [vmem:[%s5190_s8 + $0x14] sm:$0xf]  ;;  %v2325_v29 = vrot.slane %v5654_v57, 2 }
  0xa6   : > { %5024 = vmatprep.subr.msk.bf16.mxu0 %vm578_vm0, %v5592_v2  ;;  %4776 = vmatprep.mubr.msk.bf16.mxu1 %vm523_vm2, %v1453_v27  ;;  %v1977_v27 = vshll.u32 %v5654_v57, 16  ;;  %v1976_v35 = vrot.slane %v1974_v37, 1 }
  0xa7   : > { %v1963_v49 = vsel %vm1856_vm4, %v1953_v25, %v1962_v1 }
  0xa8   : > { %v1979_v4 = vrot.slane %v1977_v27, 2 }
  0xaa   : > { %v1980_v5 = vor.u32 %v1979_v4, %v1976_v35 }
  0xac   : > { %4787 = vmatmul.mubr.msk.bf16.gmra.mxu0 %vm523_vm2, %v1900_v20  ;;  %4777 = vmatmul.mubr.msk.bf16.gmra.mxu1 %vm523_vm2, %v1452_v23  ;;  %v5650_v23 = vld [vmem:[%s5190_s8 + $0x68] sm:$0xff]   ;;  %v5674_v20 = vld [vmem:[%s5190_s8 + $0x80] sm:$0xff]  }
  0xad   : > { %4790 = vmatprep.mubr.msk.bf16.mxu0 %vm523_vm2, %v1909_v54  ;;  %4820 = vmatprep.mubr.msk.bf16.mxu1 %vm523_vm2, %v2302_v45  ;;  %v1965_v34 = vshrl.u32 %v5650_v23, 16  ;;  %v1968_v55 = vshll.u32 %v5650_v23, 16  ;;  %v1986_v54 = vshll.u32 %v5670_v47, 16  ;;  %v1992_v7 = vshrl.u32 %v5674_v20, 16 }
  0xae   : > { %v1995_v45 = vshll.u32 %v5674_v20, 16  ;;  %v2323_v21 = vrot.slane %v5650_v23, 2  ;;  %v2329_v35 = vrot.slane %v5674_v20, 2 }
  0xaf   : > { %v1967_v28 = vrot.slane %v1965_v34, 1  ;;  %v1970_v44 = vrot.slane %v1968_v55, 2  ;;  %v1988_v52 = vrot.slane %v1986_v54, 2  ;;  %v1994_v56 = vrot.slane %v1992_v7, 1  ;;  %v5730_v55 = vld [vmem:[%s5190_s8 + $0x18] sm:$0xff]   ;;  %v5753_v54 = vld [vmem:[%s5190_s8 + $0x28] sm:$0xff]  }
  0xb0   : > { %v2326_v23 = vsel %vm2299_vm5, %v2323_v21, %v2325_v29 }
  0xb1   : > { %v1971_v36 = vor.u32 %v1970_v44, %v1967_v28  ;;  %v1989_v38 = vor.u32 %v1988_v52, %v1985_v31  ;;  %v2327_v28 = vrot.slane %v5670_v47, 2  ;;  %v2331_v52 = vrot.slane %v5690_v14, 2 }
  0xb3   : > { %v1972_v51 = vsel %vm1856_vm4, %v1962_v1, %v1971_v36  ;;  %v1981_v50 = vsel %vm1856_vm4, %v1971_v36, %v1980_v5  ;;  %v1990_v39 = vsel %vm1856_vm4, %v1980_v5, %v1989_v38  ;;  %v2324_v1 = vsel %vm2299_vm5, %v2321_v8, %v2323_v21 }
  0xb4   : > { %4791 = vmatmul.mubr.msk.bf16.gmra.mxu0 %vm523_vm2, %v1918_v22  ;;  %4821 = vmatmul.mubr.msk.bf16.vlgmr.msra.gmra.mxu1 %vm523_vm2, %v2304_v6  ;;  %v1997_v22 = vrot.slane %v1995_v45, 2  ;;  %v2010_v6 = vshrl.u32 %v5694_v58, 16  ;;  %v2328_v5 = vsel %vm2299_vm5, %v2325_v29, %v2327_v28  ;;  %v2330_v20 = vsel %vm2299_vm5, %v2327_v28, %v2329_v35 }
  0xb5   : > { %4794 = vmatprep.mubr.msk.bf16.mxu0 %vm523_vm2, %v1927_v61  ;;  %4824 = vmatprep.mubr.msk.bf16.mxu1 %vm523_vm2, %v2306_v12  ;;  %v2001_v61 = vshrl.u32 %v5690_v14, 16  ;;  %v2013_v12 = vshll.u32 %v5694_v58, 16 }
  0xb6   : > { %4895 = vmatpush3.bf16.msra.mxu1 %v3278_v30  ;;  %v1998_v62 = vor.u32 %v1997_v22, %v1994_v56  ;;  %v2319_v30 = vrot.slane %v5628_v60, 2  ;;  %v2012_v13 = vrot.slane %v2010_v6, 1  ;;  %v5775_v6 = vld [vmem:[%s5190_s8 + $0x30] sm:$0xff]  }
  0xb7   : > { %v2003_v10 = vrot.slane %v2001_v61, 1  ;;  %v2015_v18 = vrot.slane %v2013_v12, 2  ;;  %v3065_v61 = vshll.u32 %v5730_v55, 16 }
  0xb8   : > { %v1999_v43 = vsel %vm1856_vm4, %v1989_v38, %v1998_v62  ;;  %v2320_v46 = vsel %vm2299_vm5, %v2317_v16, %v2319_v30  ;;  %v3062_v38 = vshrl.u32 %v5730_v55, 16 }
  0xb9   : > { %v2007_v60 = vor.u32 %v2006_v11, %v2003_v10  ;;  %v2016_v53 = vor.u32 %v2015_v18, %v2012_v13  ;;  %v2332_v10 = vsel %vm2299_vm5, %v2329_v35, %v2331_v52 }
  0xbb   : > { %v2017_v25 = vsel %vm1856_vm4, %v2007_v60, %v2016_v53 }
  0xbc   : > { %4795 = vmatmul.mubr.msk.bf16.gmra.mxu0 %vm523_vm2, %v1936_v19  ;;  %4825 = vmatmul.mubr.msk.bf16.gmra.mxu1 %vm523_vm2, %v2308_v63  ;;  %v2322_v19 = vsel %vm2299_vm5, %v2319_v30, %v2321_v8  ;;  %v2008_v63 = vsel %vm1856_vm4, %v1998_v62, %v2007_v60  ;;  %v5779_v8 = vld [vmem:[%s5190_s8 + $0x38] sm:$0xff]   ;;  %v3067_v60 = vrot.slane %v3065_v61, 3 }
  0xbd   : > { %4798 = vmatprep.mubr.msk.bf16.mxu0 %vm523_vm2, %v1945_v24  ;;  %4828 = vmatprep.mubr.msk.bf16.mxu1 %vm523_vm2, %v2310_v9  ;;  %v2607_v24 = vld [vmem:[%s5190_s8 + $0x10] sm:$0xc]  ;;  %v2019_v9 = vshll.u32 %v5715_v3, 16  ;;  %v2748_v29 = vrot.slane %v5779_v8, 2 }
  0xbe   : > { %v4333_v34 = vcombine.low %v2607_v24, %v5722_v26 }
  0xbf   : > { %v2021_v57 = vrot.slane %v2019_v9, 2  ;;  %v2335_v9 = vrot.slane %v5715_v3, 2 }
  0xc0   : > { %v2739_v41 = vrot.slane %v4333_v34, 2 }
  0xc1   : > { %v2022_v4 = vsel %vm1856_vm4, %v2016_v53, %v2021_v57 }
  0xc4   : > { %4799 = vmatmul.mubr.msk.bf16.gmra.mxu0 %vm523_vm2, %v1954_v42  ;;  %4829 = vmatmul.mubr.msk.bf16.gmra.mxu1 %vm523_vm2, %v2312_v15  ;;  %v2740_v42 = vrot.slane %v5730_v55, 2  ;;  %v5747_v15 = vld [vmem:[%s5190_s8 + $0x20] sm:$0xff]  }
  0xc5   : > { %4802 = vmatprep.mubr.msk.bf16.mxu0 %vm523_vm2, %v1963_v49  ;;  %4832 = vmatprep.mubr.msk.bf16.mxu1 %vm523_vm2, %v2314_v32  ;;  %v2742_v45 = vrot.slane %v5747_v15, 2 }
  0xc6   : > { %v2741_v17 = vsel %vm2299_vm5, %v2739_v41, %v2740_v42  ;;  %v3083_v41 = vshll.u32 %v5753_v54, 16 }
  0xc7   : > { %v2743_v62 = vsel %vm2299_vm5, %v2740_v42, %v2742_v45 }
  0xcc   : > { %4803 = vmatmul.mubr.msk.bf16.gmra.mxu0 %vm523_vm2, %v1972_v51  ;;  %4833 = vmatmul.mubr.msk.bf16.gmra.mxu1 %vm523_vm2, %v2316_v59  ;;  %v2744_v51 = vrot.slane %v5753_v54, 2  ;;  %v3054_v59 = vshrl.u32 %v4333_v34, 16 }
  0xcd   : > { %4806 = vmatprep.mubr.msk.bf16.mxu0 %vm523_vm2, %v1981_v50  ;;  %4836 = vmatprep.mubr.msk.bf16.mxu1 %vm523_vm2, %v2318_v48  ;;  %v2333_v50 = vrot.slane %v5694_v58, 2  ;;  %v3057_v48 = vshll.u32 %v4333_v34, 16  ;;  %v3592_v58 = vsel %vm578_vm0, %v5592_v2, 0  ;;  %v2746_v2 = vrot.slane %v5775_v6, 2 }
  0xce   : > { %v2745_v14 = vsel %vm2299_vm5, %v2742_v45, %v2744_v51  ;;  %v3056_v18 = vrot.slane %v3054_v59, 2  ;;  %v3074_v34 = vshll.u32 %v5747_v15, 16 }
  0xcf   : > { %v2334_v11 = vsel %vm2299_vm5, %v2331_v52, %v2333_v50  ;;  %v2747_v28 = vsel %vm2299_vm5, %v2744_v51, %v2746_v2  ;;  %v3085_v52 = vrot.slane %v3083_v41, 3 }
  0xd4   : > { %4807 = vmatmul.mubr.msk.bf16.gmra.mxu0 %vm523_vm2, %v1990_v39  ;;  %4837 = vmatmul.mubr.msk.bf16.gmra.mxu1 %vm523_vm2, %v2320_v46  ;;  %v3059_v46 = vrot.slane %v3057_v48, 3 }
  0xd5   : > { %4810 = vmatprep.mubr.msk.bf16.mxu0 %vm523_vm2, %v1999_v43  ;;  %4840 = vmatprep.mubr.msk.bf16.mxu1 %vm523_vm2, %v2322_v19  ;;  %v3064_v19 = vrot.slane %v3062_v38, 2 }
  0xd7   : > { %v3068_v57 = vor.u32 %v3067_v60, %v3064_v19 }
  0xdc   : > { %v4632_v37 = vpop.f32.mrf.mxu0  ;;  %4811 = vmatmul.mubr.msk.bf16.gmra.mxu0 %vm523_vm2, %v2008_v63  ;;  %v5736_v27 = vpop.f32.mrf.mxu1  ;;  %4841 = vmatmul.mubr.msk.bf16.gmra.mxu1 %vm523_vm2, %v2324_v1 }
  0xdd   : > { %4814 = vmatprep.mubr.msk.bf16.mxu0 %vm523_vm2, %v2017_v25  ;;  %6673 = vst [vmem:[#allocation2_spill] sm:$0xff] %v5736_v27  ;;  %4844 = vmatprep.mubr.msk.bf16.mxu1 %vm523_vm2, %v2326_v23  ;;  %v3071_v25 = vshrl.u32 %v5747_v15, 16  ;;  %v3060_v23 = vor.u32 %v3059_v46, %v3056_v18  ;;  %v5834_v18 = vld [vmem:[%s5190_s8 + $0x50] sm:$0xff]  }
  0xde   : > { %v616_v40 = vpop.f32.mrf.mxu0  ;;  %v5742_v44 = vpop.f32.mrf.mxu1 }
  0xdf   : > { %6674 = vst [vmem:[#allocation3_spill] sm:$0xff] %v5742_v44 }
  0xe0   : > { %v4633_v49 = vpop.f32.mrf.mxu0  ;;  %v5749_v32 = vpop.f32.mrf.mxu1 }
  0xe1   : > { %6675 = vst [vmem:[#allocation4_spill] sm:$0xff] %v5749_v32 }
  0xe2   : > { %v619_v36 = vpop.f32.mrf.mxu0  ;;  %v5756_v7 = vpop.f32.mrf.mxu1 }
  0xe3   : > { %6676 = vst [vmem:[#allocation5_spill] sm:$0xff] %v5756_v7 }
  0xe4   : > { %v4636_v47 = vpop.f32.mrf.mxu0  ;;  %4815 = vmatmul.mubr.msk.bf16.gmra.mxu0 %vm523_vm2, %v2022_v4  ;;  %v4670_v0 = vpop.f32.mrf.mxu1  ;;  %4845 = vmatmul.mubr.msk.bf16.gmra.mxu1 %vm523_vm2, %v2328_v5  ;;  %v2749_v4 = vsel %vm2299_vm5, %v2746_v2, %v2748_v29  ;;  %v2336_v5 = vsel %vm2299_vm5, %v2333_v50, %v2335_v9  ;;  %v5838_v2 = vld [vmem:[%s5190_s8 + $0x58] sm:$0xff]  }
  0xe5   : > { %4858 = vmatprep.mubr.msk.bf16.mxu0 %vm523_vm2, %v2741_v17  ;;  %v5764_v31 = vadd.f32 %v4670_v0, %v4632_v37  ;;  %4848 = vmatprep.mubr.msk.bf16.mxu1 %vm523_vm2, %v2330_v20  ;;  %v3076_v20 = vrot.slane %v3074_v34, 3 }
  0xe6   : > { %v632_v16 = vpop.f32.mrf.mxu0  ;;  %v836_v56 = vpop.f32.mrf.mxu1 }
  0xe7   : > { %v5771_v33 = vadd.f32 %v836_v56, %v616_v40  ;;  %v3080_v40 = vshrl.u32 %v5753_v54, 16 }
  0xe8   : > { %v4637_v22 = vpop.f32.mrf.mxu0  ;;  %v4671_v12 = vpop.f32.mrf.mxu1 }
  0xe9   : > { %v5783_v39 = vadd.f32 %v4671_v12, %v4633_v49  ;;  %v5806_v49 = vld [vmem:[%s5190_s8 + $0x40] sm:$0xff]   ;;  %v3082_v51 = vrot.slane %v3080_v40, 2  ;;  %v3092_v12 = vshll.u32 %v5775_v6, 16 }
  0xea   : > { %v635_v30 = vpop.f32.mrf.mxu0  ;;  %v839_v43 = vpop.f32.mrf.mxu1  ;;  %v2750_v59 = vrot.slane %v5806_v49, 2 }
  0xeb   : > { %v5788_v53 = vadd.f32 %v839_v43, %v619_v36  ;;  %v5810_v36 = vld [vmem:[%s5190_s8 + $0x48] sm:$0xff]   ;;  %v3094_v34 = vrot.slane %v3092_v12, 3 }
  0xec   : > { %v4640_v13 = vpop.f32.mrf.mxu0  ;;  %4859 = vmatmul.mubr.msk.bf16.vlgmr.msra.gmra.mxu0 %vm523_vm2, %v2743_v62  ;;  %v4674_v21 = vpop.f32.mrf.mxu1  ;;  %4849 = vmatmul.mubr.msk.bf16.gmra.mxu1 %vm523_vm2, %v2332_v10  ;;  %v2752_v48 = vrot.slane %v5810_v36, 2  ;;  %v3089_v62 = vshrl.u32 %v5775_v6, 16  ;;  %v3098_v10 = vshrl.u32 %v5779_v8, 16 }
  0xed   : > { %4862 = vmatprep.mubr.msk.bf16.mxu0 %vm523_vm2, %v2745_v14  ;;  %4933 = vmatpush3.bf16.msra.mxu0 %v3592_v58  ;;  %v5794_v63 = vadd.f32 %v4674_v21, %v4636_v47  ;;  %v3073_v47 = vrot.slane %v3071_v25, 2  ;;  %v3086_v58 = vor.u32 %v3085_v52, %v3082_v51  ;;  %v3116_v51 = vshrl.u32 %v5810_v36, 16 }
  0xee   : > { %v648_v24 = vpop.f32.mrf.mxu0  ;;  %4852 = vmatprep.mubr.msk.bf16.mxu1 %vm523_vm2, %v2334_v11  ;;  %v852_v1 = vpop.f32.mrf.mxu1  ;;  %v3101_v11 = vshll.u32 %v5779_v8, 16  ;;  %v2753_v60 = vsel %vm2299_vm5, %v2750_v59, %v2752_v48  ;;  %v3091_v25 = vrot.slane %v3089_v62, 2  ;;  %v3119_v52 = vshll.u32 %v5810_v36, 16 }
  0xef   : > { %v5802_v42 = vadd.f32 %v852_v1, %v632_v16  ;;  %v3069_v16 = vsel %vm3052_vm6, %v3060_v23, %v3068_v57  ;;  %v3077_v61 = vor.u32 %v3076_v20, %v3073_v47  ;;  %v3110_v47 = vshll.u32 %v5806_v49, 16 }
  0xf0   : > { %v4641_v37 = vpop.f32.mrf.mxu0  ;;  %v4675_v3 = vpop.f32.mrf.mxu1  ;;  %v3103_v40 = vrot.slane %v3101_v11, 3 }
  0xf1   : > { %v5812_v17 = vadd.f32 %v4675_v3, %v4637_v22  ;;  %v3078_v9 = vsel %vm3052_vm6, %v3068_v57, %v3077_v61  ;;  %v2756_v3 = vrot.slane %v5838_v2, 2 }
  0xf2   : > { %v651_v35 = vpop.f32.mrf.mxu0  ;;  %v855_v45 = vpop.f32.mrf.mxu1 }
  0xf3   : > { %v5817_v56 = vadd.f32 %v855_v45, %v635_v30 }
  0xf4   : > { %v4644_v0 = vpop.f32.mrf.mxu0  ;;  %4863 = vmatmul.mubr.msk.bf16.gmra.mxu0 %vm523_vm2, %v2747_v28  ;;  %v4678_v22 = vpop.f32.mrf.mxu1  ;;  %4853 = vmatmul.mubr.msk.bf16.gmra.mxu1 %vm523_vm2, %v2336_v5  ;;  %v2754_v28 = vrot.slane %v5834_v18, 2  ;;  %v3095_v5 = vor.u32 %v3094_v34, %v3091_v25  ;;  %v3121_v25 = vrot.slane %v3119_v52, 3  ;;  %v5890_v52 = vld [vmem:[%s5190_s8 + $0x70] sm:$0xff]  }
  0xf5   : > { %4866 = vmatprep.mubr.msk.bf16.mxu0 %vm523_vm2, %v2749_v4  ;;  %v5823_v38 = vadd.f32 %v4678_v22, %v4640_v13  ;;  %4896 = vmatprep.mubr.msk.bf16.mxu1 %vm523_vm2, %v3069_v16  ;;  %v2751_v13 = vsel %vm2299_vm5, %v2748_v29, %v2750_v59  ;;  %v3100_v29 = vrot.slane %v3098_v10, 2  ;;  %v5862_v22 = vld [vmem:[%s5190_s8 + $0x60] sm:$0xff]   ;;  %6679 = vst [vmem:[#allocation8_spill] sm:$0xff] %v5890_v52 }
  0xf6   : > { %v664_v50 = vpop.f32.mrf.mxu0  ;;  %v868_v30 = vpop.f32.mrf.mxu1  ;;  %6677 = vst [vmem:[#allocation6_spill] sm:$0xff] %v5862_v22  ;;  %v2757_v12 = vsel %vm2299_vm5, %v2754_v28, %v2756_v3  ;;  %v3096_v11 = vsel %vm3052_vm6, %v3086_v58, %v3095_v5 }
  0xf7   : > { %v5830_v43 = vadd.f32 %v868_v30, %v648_v24  ;;  %v3087_v24 = vsel %vm3052_vm6, %v3077_v61, %v3086_v58  ;;  %v3104_v16 = vor.u32 %v3103_v40, %v3100_v29  ;;  %v5866_v30 = vld [vmem:[%s5190_s8 + $0x68] sm:$0xff]  }
  0xf8   : > { %v4645_v14 = vpop.f32.mrf.mxu0  ;;  %v4679_v46 = vpop.f32.mrf.mxu1  ;;  %6678 = vst [vmem:[#allocation7_spill] sm:$0xff] %v5866_v30 }
  0xf9   : > { %v5840_v21 = vadd.f32 %v4679_v46, %v4641_v37  ;;  %v3112_v46 = vrot.slane %v3110_v47, 3  ;;  %v3134_v47 = vshrl.u32 %v5838_v2, 16 }
  0xfa   : > { %v667_v19 = vpop.f32.mrf.mxu0  ;;  %v871_v1 = vpop.f32.mrf.mxu1 }
  0xfb   : > { %v5845_v41 = vadd.f32 %v871_v1, %v651_v35  ;;  %v3107_v35 = vshrl.u32 %v5806_v49, 16  ;;  %v2758_v1 = vrot.slane %v5862_v22, 2 }
  0xfc   : > { %v4648_v23 = vpop.f32.mrf.mxu0  ;;  %4867 = vmatmul.mubr.msk.bf16.gmra.mxu0 %vm523_vm2, %v2751_v13  ;;  %v4682_v37 = vpop.f32.mrf.mxu1  ;;  %4897 = vmatmul.mubr.msk.bf16.vlgmr.msra.gmra.mxu1 %vm523_vm2, %v3078_v9 }
  0xfd   : > { %4870 = vmatprep.mubr.msk.bf16.mxu0 %vm523_vm2, %v2753_v60  ;;  %v5851_v4 = vadd.f32 %v4682_v37, %v4644_v0  ;;  %4900 = vmatprep.mubr.msk.bf16.mxu1 %vm523_vm2, %v3087_v24  ;;  %v2755_v0 = vsel %vm2299_vm5, %v2752_v48, %v2754_v28  ;;  %v3109_v13 = vrot.slane %v3107_v35, 2  ;;  %v3118_v48 = vrot.slane %v3116_v51, 2 }
  0xfe   : > { %v680_v57 = vpop.f32.mrf.mxu0  ;;  %v884_v20 = vpop.f32.mrf.mxu1  ;;  %v2760_v24 = vrot.slane %v5866_v30, 2  ;;  %v3128_v28 = vshll.u32 %v5834_v18, 16 }
  0xff   : > { %v5858_v59 = vadd.f32 %v884_v20, %v664_v50  ;;  %v3105_v50 = vsel %vm3052_vm6, %v3095_v5, %v3104_v16  ;;  %v3113_v40 = vor.u32 %v3112_v46, %v3109_v13  ;;  %v3122_v35 = vor.u32 %v3121_v25, %v3118_v48 }
 0x100   : > { %v4649_v45 = vpop.f32.mrf.mxu0  ;;  %v4683_v61 = vpop.f32.mrf.mxu1  ;;  %v3137_v20 = vshll.u32 %v5838_v2, 16 }
 0x101   : > { %v5868_v10 = vadd.f32 %v4683_v61, %v4645_v14  ;;  %v3114_v46 = vsel %vm3052_vm6, %v3104_v16, %v3113_v40 }
 0x102   : > { %v683_v62 = vpop.f32.mrf.mxu0  ;;  %v887_v60 = vpop.f32.mrf.mxu1 }
 0x103   : > { %v5873_v34 = vadd.f32 %v887_v60, %v667_v19  ;;  %v3125_v19 = vshrl.u32 %v5834_v18, 16 }
 0x104   : > { %v4652_v9 = vpop.f32.mrf.mxu0  ;;  %4871 = vmatmul.mubr.msk.bf16.gmra.mxu0 %vm523_vm2, %v2755_v0  ;;  %v4686_v14 = vpop.f32.mrf.mxu1  ;;  %4901 = vmatmul.mubr.msk.bf16.gmra.mxu1 %vm523_vm2, %v3096_v11  ;;  %v5894_v11 = vld [vmem:[%s5190_s8 + $0x78] sm:$0xff]  }
 0x105   : > { %4874 = vmatprep.mubr.msk.bf16.mxu0 %vm523_vm2, %v2757_v12  ;;  %v5879_v29 = vadd.f32 %v4686_v14, %v4648_v23  ;;  %4904 = vmatprep.mubr.msk.bf16.mxu1 %vm523_vm2, %v3105_v50  ;;  %v2759_v23 = vsel %vm2299_vm5, %v2756_v3, %v2758_v1  ;;  %v2761_v12 = vsel %vm2299_vm5, %v2758_v1, %v2760_v24  ;;  %v3127_v60 = vrot.slane %v3125_v19, 2 }
 0x106   : > { %v696_v58 = vpop.f32.mrf.mxu0  ;;  %v900_v37 = vpop.f32.mrf.mxu1  ;;  %6680 = vst [vmem:[#allocation9_spill] sm:$0xff] %v5894_v11  ;;  %v3130_v50 = vrot.slane %v3128_v28, 3  ;;  %v3136_v3 = vrot.slane %v3134_v47, 2  ;;  %v3139_v14 = vrot.slane %v3137_v20, 3  ;;  %v2762_v1 = vrot.slane %v5890_v52, 2 }
 0x107   : > { %v5886_v51 = vadd.f32 %v900_v37, %v680_v57  ;;  %v3123_v57 = vsel %vm3052_vm6, %v3113_v40, %v3122_v35  ;;  %v2764_v19 = vrot.slane %v5894_v11, 2  ;;  %v3146_v47 = vshll.u32 %v5862_v22, 16 }
 0x108   : > { %v4653_v5 = vpop.f32.mrf.mxu0  ;;  %v4687_v0 = vpop.f32.mrf.mxu1  ;;  %v3131_v40 = vor.u32 %v3130_v50, %v3127_v60  ;;  %v5922_v50 = vld [vmem:[%s5190_s8 + $0x88] sm:$0xff]  }
 0x109   : > { %v5896_v13 = vadd.f32 %v4687_v0, %v4649_v45  ;;  %v3140_v0 = vor.u32 %v3139_v14, %v3136_v3  ;;  %v2765_v60 = vsel %vm2299_vm5, %v2762_v1, %v2764_v19  ;;  %6682 = vst [vmem:[#allocation11_spill] sm:$0xff] %v5922_v50  ;;  %v3148_v44 = vrot.slane %v3146_v47, 3 }
 0x10a   : > { %v699_v61 = vpop.f32.mrf.mxu0  ;;  %v903_v48 = vpop.f32.mrf.mxu1  ;;  %v3132_v3 = vsel %vm3052_vm6, %v3122_v35, %v3131_v40  ;;  %v2768_v35 = vrot.slane %v5922_v50, 2  ;;  %v3164_v47 = vshll.u32 %v5890_v52, 16 }
 0x10b   : > { %v5901_v37 = vadd.f32 %v903_v48, %v683_v62  ;;  %v3143_v62 = vshrl.u32 %v5862_v22, 16 }
 0x10c   : > { %v4656_v25 = vpop.f32.mrf.mxu0  ;;  %4875 = vmatmul.mubr.msk.bf16.gmra.mxu0 %vm523_vm2, %v2759_v23  ;;  %v4690_v45 = vpop.f32.mrf.mxu1  ;;  %4905 = vmatmul.mubr.msk.bf16.gmra.mxu1 %vm523_vm2, %v3114_v46  ;;  %v3155_v46 = vshll.u32 %v5866_v30, 16 }
 0x10d   : > { %4878 = vmatprep.mubr.msk.bf16.mxu0 %vm523_vm2, %v2761_v12  ;;  %v5907_v28 = vadd.f32 %v4690_v45, %v4652_v9  ;;  %4908 = vmatprep.mubr.msk.bf16.mxu1 %vm523_vm2, %v3123_v57  ;;  %v3152_v12 = vshrl.u32 %v5866_v30, 16  ;;  %v2763_v9 = vsel %vm2299_vm5, %v2760_v24, %v2762_v1  ;;  %v5918_v45 = vld [vmem:[%s5190_s8 + $0x80] sm:$0xff]   ;;  %v3145_v14 = vrot.slane %v3143_v62, 2 }
 0x10e   : > { %v712_v16 = vpop.f32.mrf.mxu0  ;;  %v916_v20 = vpop.f32.mrf.mxu1  ;;  %6681 = vst [vmem:[#allocation10_spill] sm:$0xff] %v5918_v45  ;;  %v2766_v1 = vrot.slane %v5918_v45, 2  ;;  %v3161_v62 = vshrl.u32 %v5890_v52, 16 }
 0x10f   : > { %v5914_v48 = vadd.f32 %v916_v20, %v696_v58  ;;  %v3141_v58 = vsel %vm3052_vm6, %v3131_v40, %v3140_v0  ;;  %v3154_v24 = vrot.slane %v3152_v12, 2  ;;  %v3157_v20 = vrot.slane %v3155_v46, 3 }
 0x110   : > { %v4657_v23 = vpop.f32.mrf.mxu0  ;;  %v4691_v7 = vpop.f32.mrf.mxu1 }
 0x111   : > { %v5924_v32 = vadd.f32 %v4691_v7, %v4653_v5  ;;  %v3158_v46 = vor.u32 %v3157_v20, %v3154_v24 }
 0x112   : > { %v715_v57 = vpop.f32.mrf.mxu0  ;;  %v919_v27 = vpop.f32.mrf.mxu1 }
 0x113   : > { %6683 = vst [vmem:[#allocation12_spill] sm:$0xff] %v5924_v32  ;;  %v5929_v22 = vadd.f32 %v919_v27, %v699_v61  ;;  %v3149_v27 = vor.u32 %v3148_v44, %v3145_v14  ;;  %v5946_v32 = vld [vmem:[%s5190_s8 + $0x90] sm:$0xff]   ;;  %v5950_v44 = vld [vmem:[%s5190_s8 + $0x98] sm:$0xff]  }
 0x114   : > { %v4660_v30 = vpop.f32.mrf.mxu0  ;;  %4879 = vmatmul.mubr.msk.bf16.gmra.mxu0 %vm523_vm2, %v2763_v9  ;;  %v4694_v7 = vpop.f32.mrf.mxu1  ;;  %4909 = vmatmul.mubr.msk.bf16.gmra.mxu1 %vm523_vm2, %v3132_v3  ;;  %v3170_v9 = vshrl.u32 %v5894_v11, 16 }
 0x115   : > { %6684 = vst [vmem:[#allocation13_spill] sm:$0xff] %v5929_v22  ;;  %4882 = vmatprep.mubr.msk.bf16.mxu0 %vm523_vm2, %v2765_v60  ;;  %v5937_v40 = vadd.f32 %v4694_v7, %v4656_v25  ;;  %4912 = vmatprep.mubr.msk.bf16.mxu1 %vm523_vm2, %v3141_v58  ;;  %v3173_v60 = vshll.u32 %v5894_v11, 16  ;;  %v2767_v22 = vsel %vm2299_vm5, %v2764_v19, %v2766_v1  ;;  %v3166_v58 = vrot.slane %v3164_v47, 3 }
 0x116   : > { %v728_v5 = vpop.f32.mrf.mxu0  ;;  %v932_v61 = vpop.f32.mrf.mxu1  ;;  %v2769_v7 = vsel %vm2299_vm5, %v2766_v1, %v2768_v35  ;;  %v3150_v24 = vsel %vm3052_vm6, %v3140_v0, %v3149_v27  ;;  %v3172_v19 = vrot.slane %v3170_v9, 2 }
 0x117   : > { %6685 = vst [vmem:[#allocation14_spill] sm:$0xff] %v5937_v40  ;;  %v5942_v3 = vadd.f32 %v932_v61, %v712_v16  ;;  %v3163_v40 = vrot.slane %v3161_v62, 2  ;;  %v3159_v16 = vsel %vm3052_vm6, %v3149_v27, %v3158_v46  ;;  %v3175_v61 = vrot.slane %v3173_v60, 3  ;;  %v3493_v27 = vld [vmem:[%s5190_s8 + $0x10] sm:$0x8] }
 0x118   : > { %v4661_v12 = vpop.f32.mrf.mxu0  ;;  %v4695_v52 = vpop.f32.mrf.mxu1 }
 0x119   : > { %6686 = vst [vmem:[#allocation15_spill] sm:$0xff] %v5942_v3  ;;  %v5952_v14 = vadd.f32 %v4695_v52, %v4657_v23  ;;  %v2770_v52 = vrot.slane %v5946_v32, 2  ;;  %v3167_v62 = vor.u32 %v3166_v58, %v3163_v40  ;;  %v3188_v40 = vshrl.u32 %v5922_v50, 16 }
 0x11a   : > { %v731_v25 = vpop.f32.mrf.mxu0  ;;  %v935_v20 = vpop.f32.mrf.mxu1  ;;  %v3191_v58 = vshll.u32 %v5922_v50, 16 }
 0x11b   : > { %v5957_v3 = vadd.f32 %v935_v20, %v715_v57  ;;  %v5113_v20 = vld [vmem:[%s5190_s8 + $0xa0] ss:$0 sps:$4 sm:$0x11]  }
 0x11c   : > { %v4708_v11 = vpop.f32.mrf.mxu0  ;;  %4883 = vmatmul.mubr.msk.bf16.gmra.mxu0 %vm523_vm2, %v2767_v22  ;;  %v4698_v23 = vpop.f32.mrf.mxu1  ;;  %4913 = vmatmul.mubr.msk.bf16.gmra.mxu1 %vm523_vm2, %v3150_v24  ;;  %v2772_v22 = vrot.slane %v5950_v44, 2 }
 0x11d   : > { %v5960_v1 = vadd.f32 %v4708_v11, %v5764_v31  ;;  %4886 = vmatprep.mubr.msk.bf16.mxu0 %vm523_vm2, %v2769_v7  ;;  %v5966_v47 = vadd.f32 %v4698_v23, %v4660_v30  ;;  %4916 = vmatprep.mubr.msk.bf16.mxu1 %vm523_vm2, %v3159_v16  ;;  %v3179_v31 = vshrl.u32 %v5918_v45, 16  ;;  %v3182_v11 = vshll.u32 %v5918_v45, 16 }
 0x11e   : > { %v1112_v0 = vpop.f32.mrf.mxu0  ;;  %v948_v9 = vpop.f32.mrf.mxu1  ;;  %v3176_v7 = vor.u32 %v3175_v61, %v3172_v19  ;;  %v2773_v45 = vsel %vm2299_vm5, %v2770_v52, %v2772_v22  ;;  %v4391_v19 = vcombine.low %v3493_v27, %v5722_v26  ;;  %v2774_v26 = vrot.slane %v5113_v20, 2 }
 0x11f   : > { %6687 = vst [vmem:[#allocation16_spill] sm:$0xff] %v5966_v47  ;;  %v5969_v57 = vadd.f32 %v1112_v0, %v5771_v33  ;;  %v5977_v24 = vadd.f32 %v948_v9, %v728_v5  ;;  %v2771_v33 = vsel %vm2299_vm5, %v2768_v35, %v2770_v52  ;;  %v3168_v0 = vsel %vm3052_vm6, %v3158_v46, %v3167_v62 }
 0x120   : > { %v4709_v60 = vpop.f32.mrf.mxu0  ;;  %v4699_v16 = vpop.f32.mrf.mxu1  ;;  %v3181_v5 = vrot.slane %v3179_v31, 2  ;;  %v3184_v9 = vrot.slane %v3182_v11, 3  ;;  %v3177_v35 = vsel %vm3052_vm6, %v3167_v62, %v3176_v7  ;;  %v3193_v47 = vrot.slane %v3191_v58, 3 }
 0x121   : > { %6688 = vst [vmem:[#allocation17_spill] sm:$0xff] %v5977_v24  ;;  %v5980_v30 = vadd.f32 %v4709_v60, %v5783_v39  ;;  %v5987_v61 = vadd.f32 %v4699_v16, %v4661_v12  ;;  %v3190_v24 = vrot.slane %v3188_v40, 2  ;;  %v3500_v31 = vrot.slane %v4391_v19, 3 }
 0x122   : > { %v1115_v23 = vpop.f32.mrf.mxu0  ;;  %v951_v39 = vpop.f32.mrf.mxu1  ;;  %v3501_v11 = vrot.slane %v5730_v55, 3  ;;  %v3197_v62 = vshrl.u32 %v5946_v32, 16  ;;  %v3200_v27 = vshll.u32 %v5946_v32, 16  ;;  %v3209_v55 = vshll.u32 %v5950_v44, 16 }
 0x123   : > { %v5990_v50 = vadd.f32 %v1115_v23, %v5788_v53  ;;  %v5994_v46 = vadd.f32 %v951_v39, %v731_v25  ;;  %v3194_v58 = vor.u32 %v3193_v47, %v3190_v24  ;;  %v2775_v16 = vsel %vm2299_vm5, %v2772_v22, %v2774_v26  ;;  %v6026_v24 = vld [vmem:[%s5190_s8 + $0xa0] ss:$0 sps:$4 sm:$0x33]  }
 0x124   : > { %v4712_v60 = vpop.f32.mrf.mxu0  ;;  %4887 = vmatmul.mubr.msk.bf16.gmra.mxu0 %vm523_vm2, %v2771_v33  ;;  %v6000_v53 = vpop.f32.mrf.mxu1  ;;  %4917 = vmatmul.mubr.msk.bf16.gmra.mxu1 %vm523_vm2, %v3168_v0  ;;  %v3206_v33 = vshrl.u32 %v5950_v44, 16  ;;  %v3502_v0 = vsel %vm3499_vm7, %v3500_v31, %v3501_v11  ;;  %v3199_v19 = vrot.slane %v3197_v62, 2  ;;  %v3505_v62 = vrot.slane %v5753_v54, 3 }
 0x125   : > { %v5997_v52 = vadd.f32 %v4712_v60, %v5794_v63  ;;  %4890 = vmatprep.mubr.msk.bf16.mxu0 %vm523_vm2, %v2773_v45  ;;  %4920 = vmatprep.mubr.msk.bf16.mxu1 %vm523_vm2, %v3177_v35  ;;  %v3185_v63 = vor.u32 %v3184_v9, %v3181_v5  ;;  %v3202_v5 = vrot.slane %v3200_v27, 3  ;;  %v3211_v35 = vrot.slane %v3209_v55, 3 }
 0x126   : > { %v1128_v12 = vpop.f32.mrf.mxu0  ;;  %v6010_v45 = vpop.f32.mrf.mxu1  ;;  %v3208_v60 = vrot.slane %v3206_v33, 2 }
 0x127   : > { %v6007_v25 = vadd.f32 %v1128_v12, %v5802_v42  ;;  %v3186_v47 = vsel %vm3052_vm6, %v3176_v7, %v3185_v63  ;;  %v3195_v22 = vsel %vm3052_vm6, %v3185_v63, %v3194_v58  ;;  %v3203_v31 = vor.u32 %v3202_v5, %v3199_v19 }
 0x128   : > { %v4713_v40 = vpop.f32.mrf.mxu0  ;;  %v6018_v42 = vpop.f32.mrf.mxu1  ;;  %v3212_v55 = vor.u32 %v3211_v35, %v3208_v60 }
 0x129   : > { %v6015_v20 = vadd.f32 %v4713_v40, %v5812_v17  ;;  %v3218_v40 = vshll.u32 %v6026_v24, 16 }
 0x12a   : > { %v1131_v23 = vpop.f32.mrf.mxu0  ;;  %v6028_v39 = vpop.f32.mrf.mxu1 }
 0x12b   : > { %v6022_v9 = vadd.f32 %v1131_v23, %v5817_v56  ;;  %v3503_v56 = vrot.slane %v5747_v15, 3 }
 0x12c   : > { %v4716_v17 = vpop.f32.mrf.mxu0  ;;  %4891 = vmatmul.mubr.msk.bf16.gmra.mxu0 %vm523_vm2, %v2775_v16  ;;  %v4746_v12 = vpop.f32.mrf.mxu1  ;;  %4921 = vmatmul.mubr.msk.bf16.gmra.mxu1 %vm523_vm2, %v3186_v47 }
 0x12d   : > { %v6033_v26 = vadd.f32 %v4716_v17, %v5823_v38  ;;  %4934 = vmatprep.mubr.msk.bf16.mxu0 %vm523_vm2, %v3502_v0  ;;  %v6040_v27 = vadd.f32 %v4746_v12, %v5960_v1  ;;  %4924 = vmatprep.mubr.msk.bf16.mxu1 %vm523_vm2, %v3195_v22  ;;  %v3215_v38 = vshrl.u32 %v6026_v24, 16  ;;  %v3504_v54 = vsel %vm3499_vm7, %v3501_v11, %v3503_v56 }
 0x12e   : > { %v1144_v7 = vpop.f32.mrf.mxu0  ;;  %v1545_v33 = vpop.f32.mrf.mxu1  ;;  %v3506_v19 = vsel %vm3499_vm7, %v3503_v56, %v3505_v62  ;;  %v3220_v22 = vrot.slane %v3218_v40, 3 }
 0x12f   : > { %v1263_v63 = vadd.f32 %v1144_v7, %v5830_v43  ;;  %v6047_v16 = vadd.f32 %v1545_v33, %v5969_v57  ;;  %v3204_v43 = vsel %vm3052_vm6, %v3194_v58, %v3203_v31  ;;  %v3217_v17 = vrot.slane %v3215_v38, 2 }
 0x130   : > { %v4717_v15 = vpop.f32.mrf.mxu0  ;;  %v4747_v1 = vpop.f32.mrf.mxu1  ;;  %v3507_v58 = vrot.slane %v5775_v6, 3 }
 0x131   : > { %v1266_v23 = vadd.f32 %v4717_v15, %v5840_v21  ;;  %v6054_v5 = vadd.f32 %v4747_v1, %v5980_v30  ;;  %v3213_v21 = vsel %vm3052_vm6, %v3203_v31, %v3212_v55  ;;  %v3221_v7 = vor.u32 %v3220_v22, %v3217_v17 }
 0x132   : > { %v1147_v0 = vpop.f32.mrf.mxu0  ;;  %v6057_v60 = vpop.f32.mrf.mxu1  ;;  %v3508_v6 = vsel %vm3499_vm7, %v3505_v62, %v3507_v58  ;;  %v3511_v62 = vrot.slane %v5806_v49, 3 }
 0x133   : > { %v1264_v47 = vadd.f32 %v1147_v0, %v5845_v41  ;;  %v3509_v41 = vrot.slane %v5779_v8, 3 }
 0x134   : > { %v4720_v57 = vpop.f32.mrf.mxu0  ;;  %4935 = vmatmul.mubr.msk.bf16.vlgmr.msra.gmra.mxu0 %vm523_vm2, %v3504_v54  ;;  %v4750_v35 = vpop.f32.mrf.mxu1  ;;  %4925 = vmatmul.mubr.msk.bf16.gmra.mxu1 %vm523_vm2, %v3204_v43 }
 0x135   : > { %v1269_v11 = vadd.f32 %v4720_v57, %v5851_v4  ;;  %4938 = vmatprep.mubr.msk.bf16.mxu0 %vm523_vm2, %v3506_v19  ;;  %v6067_v56 = vadd.f32 %v4750_v35, %v5997_v52  ;;  %4928 = vmatprep.mubr.msk.bf16.mxu1 %vm523_vm2, %v3213_v21  ;;  %v3510_v15 = vsel %vm3499_vm7, %v3507_v58, %v3509_v41 }
 0x136   : > { %v1160_v30 = vpop.f32.mrf.mxu0  ;;  %v6071_v31 = vpop.f32.mrf.mxu1  ;;  %v3512_v57 = vsel %vm3499_vm7, %v3509_v41, %v3511_v62 }
 0x137   : > { %v1267_v12 = vadd.f32 %v1160_v30, %v5858_v59  ;;  %v3222_v59 = vsel %vm3052_vm6, %v3212_v55, %v3221_v7 }
 0x138   : > { %v4721_v4 = vpop.f32.mrf.mxu0  ;;  %v4751_v40 = vpop.f32.mrf.mxu1 }
 0x139   : > { %v1270_v38 = vadd.f32 %v4721_v4, %v5868_v10  ;;  %v6077_v8 = vadd.f32 %v4751_v40, %v6015_v20  ;;  %v3517_v4 = vrot.slane %v5838_v2, 3 }
 0x13a   : > { %v1163_v33 = vpop.f32.mrf.mxu0  ;;  %v1564_v54 = vpop.f32.mrf.mxu1 }
 0x13b   : > { %v1268_v52 = vadd.f32 %v1163_v33, %v5873_v34  ;;  %v6083_v0 = vadd.f32 %v1564_v54, %v6022_v9  ;;  %v3513_v34 = vrot.slane %v5810_v36, 3 }
 0x13c   : > { %v4724_v1 = vpop.f32.mrf.mxu0  ;;  %4939 = vmatmul.mubr.msk.bf16.gmra.mxu0 %vm523_vm2, %v3508_v6  ;;  %v4754_v43 = vpop.f32.mrf.mxu1  ;;  %4929 = vmatmul.mubr.msk.bf16.gmra.mxu1 %vm523_vm2, %v3222_v59 }
 0x13d   : > { %v1273_v10 = vadd.f32 %v4724_v1, %v5879_v29  ;;  %4942 = vmatprep.mubr.msk.bf16.mxu0 %vm523_vm2, %v3510_v15  ;;  %v6091_v55 = vadd.f32 %v4754_v43, %v6033_v26  ;;  %v3514_v58 = vsel %vm3499_vm7, %v3511_v62, %v3513_v34  ;;  %v6690_v62 = vld [vmem:[#allocation13_spill] sm:$0xff] }
 0x13e   : > { %v1176_v20 = vpop.f32.mrf.mxu0  ;;  %v1577_v17 = vpop.f32.mrf.mxu1 }
 0x13f   : > { %v1271_v19 = vadd.f32 %v1176_v20, %v5886_v51  ;;  %v6094_v22 = vadd.f32 %v1577_v17, %v1263_v63  ;;  %v6692_v17 = vld [vmem:[#allocation6_spill] sm:$0xff] }
 0x140   : > { %v4725_v9 = vpop.f32.mrf.mxu0  ;;  %v4755_v49 = vpop.f32.mrf.mxu1 }
 0x141   : > { %v1274_v29 = vadd.f32 %v4725_v9, %v5896_v13  ;;  %v6099_v35 = vadd.f32 %v4755_v49, %v1266_v23  ;;  %v3515_v13 = vrot.slane %v5834_v18, 3  ;;  %v6693_v49 = vld [vmem:[#allocation7_spill] sm:$0xff] }
 0x142   : > { %v1179_v21 = vpop.f32.mrf.mxu0  ;;  %v1580_v26 = vpop.f32.mrf.mxu1 }
 0x143   : > { %v1272_v36 = vadd.f32 %v1179_v21, %v5901_v37  ;;  %v6103_v51 = vadd.f32 %v1580_v26, %v1264_v47  ;;  %v6689_v47 = vld [vmem:[#allocation12_spill] sm:$0xff]  ;;  %v3518_v18 = vsel %vm3499_vm7, %v3515_v13, %v3517_v4  ;;  %v3521_v21 = vrot.slane %v6693_v49, 3 }
 0x144   : > { %v4728_v30 = vpop.f32.mrf.mxu0  ;;  %4943 = vmatmul.mubr.msk.bf16.gmra.mxu0 %vm523_vm2, %v3512_v57  ;;  %v4758_v41 = vpop.f32.mrf.mxu1 }
 0x145   : > { %v1277_v63 = vadd.f32 %v4728_v30, %v5907_v28  ;;  %4946 = vmatprep.mubr.msk.bf16.mxu0 %vm523_vm2, %v3514_v58  ;;  %v6109_v23 = vadd.f32 %v4758_v41, %v1269_v11  ;;  %v3516_v28 = vsel %vm3499_vm7, %v3513_v34, %v3515_v13  ;;  %v3519_v34 = vrot.slane %v6692_v17, 3  ;;  %v6694_v58 = vld [vmem:[#allocation15_spill] sm:$0xff] }
 0x146   : > { %v1192_v7 = vpop.f32.mrf.mxu0  ;;  %v1593_v6 = vpop.f32.mrf.mxu1 }
 0x147   : > { %v1275_v37 = vadd.f32 %v1192_v7, %v5914_v48  ;;  %v6112_v33 = vadd.f32 %v1593_v6, %v1267_v12  ;;  %v6691_v12 = vld [vmem:[#allocation14_spill] sm:$0xff]  ;;  %v3520_v7 = vsel %vm3499_vm7, %v3517_v4, %v3519_v34 }
 0x148   : > { %v4729_v40 = vpop.f32.mrf.mxu0  ;;  %v4759_v59 = vpop.f32.mrf.mxu1 }
 0x149   : > { %v1278_v15 = vadd.f32 %v4729_v40, %v6689_v47  ;;  %v6117_v1 = vadd.f32 %v4759_v59, %v1270_v38  ;;  %v3522_v47 = vsel %vm3499_vm7, %v3519_v34, %v3521_v21  ;;  %v6698_v34 = vld [vmem:[#allocation17_spill] sm:$0xff] }
 0x14a   : > { %v1195_v54 = vpop.f32.mrf.mxu0  ;;  %v1596_v11 = vpop.f32.mrf.mxu1 }
 0x14b   : > { %v1276_v2 = vadd.f32 %v1195_v54, %v6690_v62  ;;  %v6121_v48 = vadd.f32 %v1596_v11, %v1268_v52 }
 0x14c   : > { %v4732_v43 = vpop.f32.mrf.mxu0  ;;  %4947 = vmatmul.mubr.msk.bf16.gmra.mxu0 %vm523_vm2, %v3516_v28  ;;  %v4762_v9 = vpop.f32.mrf.mxu1 }
 0x14d   : > { %v1281_v20 = vadd.f32 %v4732_v43, %v6691_v12  ;;  %4950 = vmatprep.mubr.msk.bf16.mxu0 %vm523_vm2, %v3518_v18  ;;  %v6127_v38 = vadd.f32 %v4762_v9, %v1273_v10  ;;  %v6697_v12 = vld [vmem:[#allocation9_spill] sm:$0xff] }
 0x14e   : > { %v1208_v57 = vpop.f32.mrf.mxu0  ;;  %v1609_v30 = vpop.f32.mrf.mxu1  ;;  %v3525_v17 = vrot.slane %v6697_v12, 3  ;;  %v6703_v12 = vld [vmem:[#allocation4_spill] sm:$0xff] }
 0x14f   : > { %v1279_v26 = vadd.f32 %v1208_v57, %v6694_v58  ;;  %v6130_v41 = vadd.f32 %v1609_v30, %v1271_v19  ;;  %v6695_v19 = vld [vmem:[#allocation16_spill] sm:$0xff] }
 0x150   : > { %v4733_v13 = vpop.f32.mrf.mxu0  ;;  %v4763_v6 = vpop.f32.mrf.mxu1 }
 0x151   : > { %v1282_v52 = vadd.f32 %v4733_v13, %v5952_v14  ;;  %v6135_v28 = vadd.f32 %v4763_v6, %v1274_v29  ;;  %v6696_v14 = vld [vmem:[#allocation8_spill] sm:$0xff]  ;;  %v6699_v6 = vld [vmem:[#allocation2_spill] sm:$0xff] }
 0x152   : > { %v1211_v40 = vpop.f32.mrf.mxu0  ;;  %v1612_v10 = vpop.f32.mrf.mxu1  ;;  %v3523_v4 = vrot.slane %v6696_v14, 3  ;;  %v6701_v14 = vld [vmem:[#allocation10_spill] sm:$0xff] }
 0x153   : > { %v1280_v59 = vadd.f32 %v1211_v40, %v5957_v3  ;;  %v6139_v18 = vadd.f32 %v1612_v10, %v1272_v36  ;;  %v973_v40 = vadd.f32 %v6000_v53, %v6699_v6 }
 0x154   : > { %v4736_v54 = vpop.f32.mrf.mxu0  ;;  %4951 = vmatmul.mubr.msk.bf16.gmra.mxu0 %vm523_vm2, %v3520_v7  ;;  %v4766_v11 = vpop.f32.mrf.mxu1  ;;  %v3524_v58 = vsel %vm3499_vm7, %v3521_v21, %v3523_v4  ;;  %v3526_v7 = vsel %vm3499_vm7, %v3523_v4, %v3525_v17  ;;  %v3527_v4 = vrot.slane %v6701_v14, 3 }
 0x155   : > { %v1285_v62 = vadd.f32 %v4736_v54, %v6695_v19  ;;  %4954 = vmatprep.mubr.msk.bf16.mxu0 %vm523_vm2, %v3522_v47  ;;  %v6145_v29 = vadd.f32 %v4766_v11, %v1277_v63 }
 0x156   : > { %v1224_v43 = vpop.f32.mrf.mxu0  ;;  %v1625_v9 = vpop.f32.mrf.mxu1 }
 0x157   : > { %v1283_v3 = vadd.f32 %v1224_v43, %v6698_v34  ;;  %v6148_v49 = vadd.f32 %v1625_v9, %v1275_v37  ;;  %v6700_v37 = vld [vmem:[#allocation3_spill] sm:$0xff] }
 0x158   : > { %v4737_v57 = vpop.f32.mrf.mxu0  ;;  %v4767_v30 = vpop.f32.mrf.mxu1 }
 0x159   : > { %v1286_v36 = vadd.f32 %v4737_v57, %v5987_v61  ;;  %v6155_v47 = vadd.f32 %v4767_v30, %v1278_v15  ;;  %v965_v61 = vadd.f32 %v6010_v45, %v6700_v37  ;;  %v6702_v15 = vld [vmem:[#allocation11_spill] sm:$0xff]  ;;  %v3528_v30 = vsel %vm3499_vm7, %v3525_v17, %v3527_v4 }
 0x15a   : > { %v1227_v13 = vpop.f32.mrf.mxu0  ;;  %v1628_v10 = vpop.f32.mrf.mxu1  ;;  %v3529_v43 = vrot.slane %v6702_v15, 3 }
 0x15b   : > { %v1284_v63 = vadd.f32 %v1227_v13, %v5994_v46  ;;  %v6161_v19 = vadd.f32 %v1628_v10, %v1276_v2  ;;  %v976_v46 = vadd.f32 %v6018_v42, %v6703_v12 }
 0x15c   : > { %v4740_v54 = vpop.f32.mrf.mxu0  ;;  %4955 = vmatmul.mubr.msk.bf16.gmra.mxu0 %vm523_vm2, %v3524_v58  ;;  %v4770_v11 = vpop.f32.mrf.mxu1  ;;  %v3530_v6 = vsel %vm3499_vm7, %v3527_v4, %v3529_v43 }
 0x15d   : > { %v1289_v21 = vadd.f32 %v4740_v54, %v973_v40  ;;  %4958 = vmatprep.mubr.msk.bf16.mxu0 %vm523_vm2, %v3526_v7  ;;  %v6168_v34 = vadd.f32 %v4770_v11, %v1281_v20 }
 0x15e   : > { %v1240_v53 = vpop.f32.mrf.mxu0  ;;  %v1641_v57 = vpop.f32.mrf.mxu1 }
 0x15f   : > { %v1287_v9 = vadd.f32 %v1240_v53, %v965_v61  ;;  %v6170_v45 = vadd.f32 %v1641_v57, %v1279_v26  ;;  %v3531_v26 = vrot.slane %v5946_v32, 3  ;;  %v3533_v61 = vrot.slane %v5950_v44, 3 }
 0x160   : > { %v4741_v58 = vpop.f32.mrf.mxu0  ;;  %v4771_v13 = vpop.f32.mrf.mxu1 }
 0x161   : > { %v1290_v2 = vadd.f32 %v4741_v58, %v976_v46  ;;  %v6174_v40 = vadd.f32 %v4771_v13, %v1282_v52  ;;  %v3532_v15 = vsel %vm3499_vm7, %v3529_v43, %v3531_v26  ;;  %v3534_v46 = vsel %vm3499_vm7, %v3531_v26, %v3533_v61 }
 0x162   : > { %v1243_v7 = vpop.f32.mrf.mxu0  ;;  %v1644_v10 = vpop.f32.mrf.mxu1 }
 0x163   : > { %v6177_v42 = vadd.f32 %v1644_v10, %v1280_v59  ;;  %v1689_v59 = vadd.f32 %v6057_v60, %v5990_v50  ;;  %v1692_v50 = vadd.f32 %v6071_v31, %v6007_v25  ;;  %v6704_v10 = vld [vmem:[#allocation5_spill] sm:$0xff] }
 0x164   : > { %v4784_v54 = vpop.f32.mrf.mxu0  ;;  %4959 = vmatmul.mubr.msk.bf16.gmra.mxu0 %vm523_vm2, %v3528_v30  ;;  %v4774_v37 = vpop.f32.mrf.mxu1 }
 0x165   : > { %v2259_v20 = vadd.f32 %v4784_v54, %v6040_v27  ;;  %4962 = vmatprep.mubr.msk.bf16.mxu0 %vm523_vm2, %v3530_v6  ;;  %v6183_v14 = vadd.f32 %v4774_v37, %v1285_v62  ;;  %v968_v54 = vadd.f32 %v6028_v39, %v6704_v10 }
 0x166   : > { %v2114_v17 = vpop.f32.mrf.mxu0  ;;  %v1657_v4 = vpop.f32.mrf.mxu1 }
 0x167   : > { %v2257_v52 = vadd.f32 %v2114_v17, %v6047_v16  ;;  %v6188_v53 = vadd.f32 %v1657_v4, %v1283_v3  ;;  %v3535_v3 = vrot.slane %v6026_v24, 3  ;;  %v1288_v37 = vadd.f32 %v1243_v7, %v968_v54 }
 0x168   : > { %v4785_v11 = vpop.f32.mrf.mxu0  ;;  %v4775_v32 = vpop.f32.mrf.mxu1 }
 0x169   : > { %v2260_v27 = vadd.f32 %v4785_v11, %v6054_v5  ;;  %v6193_v44 = vadd.f32 %v4775_v32, %v1286_v36 }
 0x16a   : > { %v2117_v12 = vpop.f32.mrf.mxu0  ;;  %v1660_v57 = vpop.f32.mrf.mxu1 }
 0x16b   : > { %v2258_v62 = vadd.f32 %v2117_v12, %v1689_v59  ;;  %v6198_v60 = vadd.f32 %v1660_v57, %v1284_v63 }
 0x16c   : > { %v4788_v16 = vpop.f32.mrf.mxu0  ;;  %4963 = vmatmul.mubr.msk.bf16.gmra.mxu0 %vm523_vm2, %v3532_v15  ;;  %v4778_v43 = vpop.f32.mrf.mxu1 }
 0x16d   : > { %v2263_v5 = vadd.f32 %v4788_v16, %v6067_v56  ;;  %4966 = vmatprep.mubr.msk.bf16.mxu0 %vm523_vm2, %v3534_v46  ;;  %v6203_v36 = vadd.f32 %v4778_v43, %v1289_v21  ;;  %v3536_v56 = vsel %vm3499_vm7, %v3533_v61, %v3535_v3 }
 0x16e   : > { %v2130_v58 = vpop.f32.mrf.mxu0  ;;  %v1673_v13 = vpop.f32.mrf.mxu1 }
 0x16f   : > { %v2261_v30 = vadd.f32 %v2130_v58, %v1692_v50  ;;  %v6207_v26 = vadd.f32 %v1673_v13, %v1287_v9 }
 0x170   : > { %v4789_v6 = vpop.f32.mrf.mxu0  ;;  %v4779_v31 = vpop.f32.mrf.mxu1 }
 0x171   : > { %v2264_v25 = vadd.f32 %v4789_v6, %v6077_v8  ;;  %v6211_v24 = vadd.f32 %v4779_v31, %v1290_v2 }
 0x172   : > { %v2133_v63 = vpop.f32.mrf.mxu0  ;;  %v1676_v17 = vpop.f32.mrf.mxu1 }
 0x173   : > { %v2262_v21 = vadd.f32 %v2133_v63, %v6083_v0  ;;  %v6215_v11 = vadd.f32 %v1676_v17, %v1288_v37 }
 0x174   : > { %v4792_v4 = vpop.f32.mrf.mxu0  ;;  %4967 = vmatmul.mubr.msk.bf16.gmra.mxu0 %vm523_vm2, %v3536_v56  ;;  %v4822_v9 = vpop.f32.mrf.mxu1 }
 0x175   : > { %v2267_v39 = vadd.f32 %v4792_v4, %v6091_v55  ;;  %v6218_v8 = vadd.f32 %v4822_v9, %v2259_v20 }
 0x176   : > { %v2146_v59 = vpop.f32.mrf.mxu0  ;;  %v2428_v15 = vpop.f32.mrf.mxu1 }
 0x177   : > { %v2265_v61 = vadd.f32 %v2146_v59, %v6094_v22  ;;  %v6221_v2 = vadd.f32 %v2428_v15, %v2257_v52 }
 0x178   : > { %v4793_v7 = vpop.f32.mrf.mxu0  ;;  %v4823_v32 = vpop.f32.mrf.mxu1 }
 0x179   : > { %v2268_v0 = vadd.f32 %v4793_v7, %v6099_v35  ;;  %v6224_v46 = vadd.f32 %v4823_v32, %v2260_v27 }
 0x17a   : > { %v2149_v12 = vpop.f32.mrf.mxu0  ;;  %v2431_v16 = vpop.f32.mrf.mxu1 }
 0x17b   : > { %v2266_v57 = vadd.f32 %v2149_v12, %v6103_v51  ;;  %v6227_v50 = vadd.f32 %v2431_v16, %v2258_v62 }
 0x17c   : > { %v4796_v55 = vpop.f32.mrf.mxu0  ;;  %v4826_v3 = vpop.f32.mrf.mxu1 }
 0x17d   : > { %v2271_v20 = vadd.f32 %v4796_v55, %v6109_v23  ;;  %v6230_v43 = vadd.f32 %v4826_v3, %v2263_v5 }
 0x17e   : > { %v2162_v22 = vpop.f32.mrf.mxu0  ;;  %v2444_v58 = vpop.f32.mrf.mxu1 }
 0x17f   : > { %v2269_v52 = vadd.f32 %v2162_v22, %v6112_v33  ;;  %v6233_v13 = vadd.f32 %v2444_v58, %v2261_v30 }
 0x180   : > { %v4797_v35 = vpop.f32.mrf.mxu0  ;;  %v4827_v6 = vpop.f32.mrf.mxu1 }
 0x181   : > { %v2272_v27 = vadd.f32 %v4797_v35, %v6117_v1  ;;  %v6236_v10 = vadd.f32 %v4827_v6, %v2264_v25 }
 0x182   : > { %v2165_v51 = vpop.f32.mrf.mxu0  ;;  %v2447_v54 = vpop.f32.mrf.mxu1 }
 0x183   : > { %v2270_v62 = vadd.f32 %v2165_v51, %v6121_v48  ;;  %v6239_v56 = vadd.f32 %v2447_v54, %v2262_v21 }
 0x184   : > { %v4800_v23 = vpop.f32.mrf.mxu0  ;;  %v4830_v31 = vpop.f32.mrf.mxu1 }
 0x185   : > { %v2275_v5 = vadd.f32 %v4800_v23, %v6127_v38  ;;  %v6242_v63 = vadd.f32 %v4830_v31, %v2267_v39 }
 0x186   : > { %v2178_v33 = vpop.f32.mrf.mxu0  ;;  %v2460_v37 = vpop.f32.mrf.mxu1 }
 0x187   : > { %v2273_v30 = vadd.f32 %v2178_v33, %v6130_v41  ;;  %v6245_v17 = vadd.f32 %v2460_v37, %v2265_v61 }
 0x188   : > { %v4801_v1 = vpop.f32.mrf.mxu0  ;;  %v4831_v4 = vpop.f32.mrf.mxu1 }
 0x189   : > { %v2276_v25 = vadd.f32 %v4801_v1, %v6135_v28  ;;  %v6248_v9 = vadd.f32 %v4831_v4, %v2268_v0 }
 0x18a   : > { %v2181_v48 = vpop.f32.mrf.mxu0  ;;  %v2463_v59 = vpop.f32.mrf.mxu1 }
 0x18b   : > { %v2274_v21 = vadd.f32 %v2181_v48, %v6139_v18  ;;  %v6251_v15 = vadd.f32 %v2463_v59, %v2266_v57 }
 0x18c   : > { %v4804_v38 = vpop.f32.mrf.mxu0  ;;  %v4834_v7 = vpop.f32.mrf.mxu1 }
 0x18d   : > { %v2279_v39 = vadd.f32 %v4804_v38, %v6145_v29  ;;  %v6254_v32 = vadd.f32 %v4834_v7, %v2271_v20 }
 0x18e   : > { %v2194_v41 = vpop.f32.mrf.mxu0  ;;  %v2476_v12 = vpop.f32.mrf.mxu1 }
 0x18f   : > { %v2277_v61 = vadd.f32 %v2194_v41, %v6148_v49  ;;  %v6257_v16 = vadd.f32 %v2476_v12, %v2269_v52 }
 0x190   : > { %v4805_v28 = vpop.f32.mrf.mxu0  ;;  %v4835_v55 = vpop.f32.mrf.mxu1 }
 0x191   : > { %v2280_v0 = vadd.f32 %v4805_v28, %v6155_v47  ;;  %v6260_v3 = vadd.f32 %v4835_v55, %v2272_v27 }
 0x192   : > { %v2197_v18 = vpop.f32.mrf.mxu0  ;;  %v2479_v22 = vpop.f32.mrf.mxu1 }
 0x193   : > { %v2278_v57 = vadd.f32 %v2197_v18, %v6161_v19  ;;  %v6263_v58 = vadd.f32 %v2479_v22, %v2270_v62 }
 0x194   : > { %v4808_v29 = vpop.f32.mrf.mxu0  ;;  %v4838_v35 = vpop.f32.mrf.mxu1 }
 0x195   : > { %v2283_v20 = vadd.f32 %v4808_v29, %v6168_v34  ;;  %v6266_v6 = vadd.f32 %v4838_v35, %v2275_v5 }
 0x196   : > { %v2210_v49 = vpop.f32.mrf.mxu0  ;;  %v2492_v51 = vpop.f32.mrf.mxu1 }
 0x197   : > { %v2281_v52 = vadd.f32 %v2210_v49, %v6170_v45  ;;  %v6269_v54 = vadd.f32 %v2492_v51, %v2273_v30 }
 0x198   : > { %v4809_v47 = vpop.f32.mrf.mxu0  ;;  %v4839_v23 = vpop.f32.mrf.mxu1 }
 0x199   : > { %v2284_v27 = vadd.f32 %v4809_v47, %v6174_v40  ;;  %v6272_v31 = vadd.f32 %v4839_v23, %v2276_v25 }
 0x19a   : > { %v2213_v19 = vpop.f32.mrf.mxu0  ;;  %v2495_v33 = vpop.f32.mrf.mxu1 }
 0x19b   : > { %v2282_v62 = vadd.f32 %v2213_v19, %v6177_v42  ;;  %v6275_v37 = vadd.f32 %v2495_v33, %v2274_v21 }
 0x19c   : > { %v4812_v34 = vpop.f32.mrf.mxu0  ;;  %v4842_v1 = vpop.f32.mrf.mxu1 }
 0x19d   : > { %v2287_v5 = vadd.f32 %v4812_v34, %v6183_v14  ;;  %v6278_v4 = vadd.f32 %v4842_v1, %v2279_v39 }
 0x19e   : > { %v2226_v45 = vpop.f32.mrf.mxu0  ;;  %v2508_v48 = vpop.f32.mrf.mxu1 }
 0x19f   : > { %v2285_v30 = vadd.f32 %v2226_v45, %v6188_v53  ;;  %v6281_v59 = vadd.f32 %v2508_v48, %v2277_v61 }
 0x1a0   : > { %v4813_v40 = vpop.f32.mrf.mxu0  ;;  %v4843_v38 = vpop.f32.mrf.mxu1 }
 0x1a1   : > { %v2288_v25 = vadd.f32 %v4813_v40, %v6193_v44  ;;  %v6284_v7 = vadd.f32 %v4843_v38, %v2280_v0 }
 0x1a2   : > { %v2229_v42 = vpop.f32.mrf.mxu0  ;;  %v2511_v41 = vpop.f32.mrf.mxu1 }
 0x1a3   : > { %v2286_v21 = vadd.f32 %v2229_v42, %v6198_v60  ;;  %v6287_v12 = vadd.f32 %v2511_v41, %v2278_v57 }
 0x1a4   : > { %v4816_v14 = vpop.f32.mrf.mxu0  ;;  %v4846_v28 = vpop.f32.mrf.mxu1 }
 0x1a5   : > { %v2291_v39 = vadd.f32 %v4816_v14, %v6203_v36  ;;  %v6290_v55 = vadd.f32 %v4846_v28, %v2283_v20 }
 0x1a6   : > { %v2242_v53 = vpop.f32.mrf.mxu0  ;;  %v2524_v18 = vpop.f32.mrf.mxu1 }
 0x1a7   : > { %v2289_v61 = vadd.f32 %v2242_v53, %v6207_v26  ;;  %v6293_v22 = vadd.f32 %v2524_v18, %v2281_v52 }
 0x1a8   : > { %v4817_v44 = vpop.f32.mrf.mxu0  ;;  %v4847_v29 = vpop.f32.mrf.mxu1 }
 0x1a9   : > { %v2292_v0 = vadd.f32 %v4817_v44, %v6211_v24  ;;  %v6296_v35 = vadd.f32 %v4847_v29, %v2284_v27 }
 0x1aa   : > { %v2245_v60 = vpop.f32.mrf.mxu0  ;;  %v2527_v49 = vpop.f32.mrf.mxu1 }
 0x1ab   : > { %v2290_v57 = vadd.f32 %v2245_v60, %v6215_v11  ;;  %v6299_v51 = vadd.f32 %v2527_v49, %v2282_v62 }
 0x1ac   : > { %v4860_v36 = vpop.f32.mrf.mxu0  ;;  %v4850_v47 = vpop.f32.mrf.mxu1 }
 0x1ad   : > { %v3012_v20 = vadd.f32 %v4860_v36, %v6218_v8  ;;  %v6302_v23 = vadd.f32 %v4850_v47, %v2287_v5 }
 0x1ae   : > { %v2867_v26 = vpop.f32.mrf.mxu0  ;;  %v2540_v19 = vpop.f32.mrf.mxu1 }
 0x1af   : > { %v3010_v52 = vadd.f32 %v2867_v26, %v6221_v2  ;;  %v6305_v33 = vadd.f32 %v2540_v19, %v2285_v30 }
 0x1b0   : > { %v4861_v24 = vpop.f32.mrf.mxu0  ;;  %v4851_v34 = vpop.f32.mrf.mxu1 }
 0x1b1   : > { %v3013_v27 = vadd.f32 %v4861_v24, %v6224_v46  ;;  %v6308_v1 = vadd.f32 %v4851_v34, %v2288_v25 }
 0x1b2   : > { %v2870_v11 = vpop.f32.mrf.mxu0  ;;  %v2543_v45 = vpop.f32.mrf.mxu1 }
 0x1b3   : > { %v3011_v62 = vadd.f32 %v2870_v11, %v6227_v50  ;;  %v6311_v48 = vadd.f32 %v2543_v45, %v2286_v21 }
 0x1b4   : > { %v4864_v8 = vpop.f32.mrf.mxu0  ;;  %v4854_v40 = vpop.f32.mrf.mxu1 }
 0x1b5   : > { %v3016_v5 = vadd.f32 %v4864_v8, %v6230_v43  ;;  %v6314_v38 = vadd.f32 %v4854_v40, %v2291_v39 }
 0x1b6   : > { %v2883_v2 = vpop.f32.mrf.mxu0  ;;  %v2556_v42 = vpop.f32.mrf.mxu1 }
 0x1b7   : > { %v3014_v30 = vadd.f32 %v2883_v2, %v6233_v13  ;;  %v6317_v41 = vadd.f32 %v2556_v42, %v2289_v61 }
 0x1b8   : > { %v4865_v46 = vpop.f32.mrf.mxu0  ;;  %v4855_v14 = vpop.f32.mrf.mxu1 }
 0x1b9   : > { %v3017_v25 = vadd.f32 %v4865_v46, %v6236_v10  ;;  %v6320_v28 = vadd.f32 %v4855_v14, %v2292_v0 }
 0x1ba   : > { %v2886_v50 = vpop.f32.mrf.mxu0  ;;  %v2559_v53 = vpop.f32.mrf.mxu1 }
 0x1bb   : > { %v3015_v21 = vadd.f32 %v2886_v50, %v6239_v56  ;;  %v6323_v18 = vadd.f32 %v2559_v53, %v2290_v57 }
 0x1bc   : > { %v4868_v43 = vpop.f32.mrf.mxu0  ;;  %v4898_v13 = vpop.f32.mrf.mxu1 }
 0x1bd   : > { %v6326_v39 = vadd.f32 %v4868_v43, %v6242_v63  ;;  %v6328_v29 = vadd.f32 %v4898_v13, %v3012_v20  ;;  %v3917_v43 = vlaneseq }
 0x1be   : > { %v2899_v44 = vpop.f32.mrf.mxu0  ;;  %v3314_v10 = vpop.f32.mrf.mxu1 }
 0x1bf   : > { %v6331_v61 = vadd.f32 %v2899_v44, %v6245_v17  ;;  %v6333_v0 = vadd.f32 %v3314_v10, %v3010_v52  ;;  %v3918_v10 = vshrl.u32 %v3917_v43, 7 }
 0x1c0   : > { %v4869_v60 = vpop.f32.mrf.mxu0  ;;  %v4899_v49 = vpop.f32.mrf.mxu1 }
 0x1c1   : > { %v6336_v56 = vadd.f32 %v4869_v60, %v6248_v9  ;;  %v6338_v36 = vadd.f32 %v4899_v49, %v3013_v27 }
 0x1c2   : > { %v2902_v57 = vpop.f32.mrf.mxu0  ;;  %v3317_v47 = vpop.f32.mrf.mxu1 }
 0x1c3   : > { %v6341_v63 = vadd.f32 %v2902_v57, %v6251_v15  ;;  %v6343_v26 = vadd.f32 %v3317_v47, %v3011_v62 }
 0x1c4   : > { %v4872_v20 = vpop.f32.mrf.mxu0  ;;  %v4902_v19 = vpop.f32.mrf.mxu1 }
 0x1c5   : > { %v6346_v17 = vadd.f32 %v4872_v20, %v6254_v32  ;;  %v6348_v24 = vadd.f32 %v4902_v19, %v3016_v5 }
 0x1c6   : > { %v2915_v52 = vpop.f32.mrf.mxu0  ;;  %v3330_v34 = vpop.f32.mrf.mxu1 }
 0x1c7   : > { %v6351_v9 = vadd.f32 %v2915_v52, %v6257_v16  ;;  %v6353_v11 = vadd.f32 %v3330_v34, %v3014_v30 }
 0x1c8   : > { %v4873_v27 = vpop.f32.mrf.mxu0  ;;  %v4903_v45 = vpop.f32.mrf.mxu1 }
 0x1c9   : > { %v6356_v15 = vadd.f32 %v4873_v27, %v6260_v3  ;;  %v6358_v8 = vadd.f32 %v4903_v45, %v3017_v25 }
 0x1ca   : > { %v2918_v62 = vpop.f32.mrf.mxu0  ;;  %v3333_v40 = vpop.f32.mrf.mxu1 }
 0x1cb   : > { %v6361_v32 = vadd.f32 %v2918_v62, %v6263_v58  ;;  %v6363_v2 = vadd.f32 %v3333_v40, %v3015_v21 }
 0x1cc   : > { %v4876_v5 = vpop.f32.mrf.mxu0  ;;  %v6368_v42 = vpop.f32.mrf.mxu1 }
 0x1cd   : > { %v6366_v16 = vadd.f32 %v4876_v5, %v6266_v6  ;;  %v5124_v6 = vmov 1966171168  }
 0x1ce   : > { %v2931_v30 = vpop.f32.mrf.mxu0  ;;  %v6373_v46 = vpop.f32.mrf.mxu1  ;;  %v3915_v53 = vunpack.c.l.s4 %v5124_v6 }
 0x1cf   : > { %v6371_v3 = vadd.f32 %v2931_v30, %v6269_v54 }
 0x1d0   : > { %v4877_v25 = vpop.f32.mrf.mxu0  ;;  %v6378_v58 = vpop.f32.mrf.mxu1  ;;  %v3916_v54 = vunpack.c.0.s8 %v3915_v53 }
 0x1d1   : > { %v6376_v14 = vadd.f32 %v4877_v25, %v6272_v31  ;;  %v4411_v31 = vld.sshfl [vmem:[%s6660_s1] sm:$0x13 pattern:$0x75316420] }
 0x1d2   : > { %v2934_v50 = vpop.f32.mrf.mxu0  ;;  %v6386_v60 = vpop.f32.mrf.mxu1  ;;  %v3919_v47 = vsub.s32 %v3916_v54, %v3918_v10 }
 0x1d3   : > { %v6381_v21 = vadd.f32 %v2934_v50, %v6275_v37  ;;  %v3913_v37 = vcombine.high %v4411_v31, %v4411_v31 }
 0x1d4   : > { %v4880_v13 = vpop.f32.mrf.mxu0  ;;  %v6399_v34 = vpop.f32.mrf.mxu1 }
 0x1d5   : > { %v6384_v44 = vadd.f32 %v4880_v13, %v6278_v4  ;;  %v6397_v4 = vrot.slane %v4411_v31, %v3919_v47  ;;  %v3927_v52 = vrot.slane %v3913_v37, %v3919_v47 }
 0x1d6   : > { %v2947_v49 = vpop.f32.mrf.mxu0  ;;  %v6407_v40 = vpop.f32.mrf.mxu1 }
 0x1d7   : > { %v6392_v57 = vadd.f32 %v2947_v49, %v6281_v59  ;;  %6705 = vst [vmem:[#allocation12_spill] sm:$0xff] %v6397_v4  ;;  %3971 = vmatprep.mubr.bf16.mxu1 %v3927_v52 }
 0x1d8   : > { %v4881_v20 = vpop.f32.mrf.mxu0  ;;  %v6415_v50 = vpop.f32.mrf.mxu1 }
 0x1d9   : > { %v6395_v19 = vadd.f32 %v4881_v20, %v6284_v7 }
 0x1da   : > { %v2950_v27 = vpop.f32.mrf.mxu0  ;;  %v6423_v43 = vpop.f32.mrf.mxu1 }
 0x1db   : > { %v6402_v45 = vadd.f32 %v2950_v27, %v6287_v12 }
 0x1dc   : > { %v4884_v62 = vpop.f32.mrf.mxu0  ;;  %v6431_v10 = vpop.f32.mrf.mxu1 }
 0x1dd   : > { %v6405_v59 = vadd.f32 %v4884_v62, %v6290_v55 }
 0x1de   : > { %v2963_v5 = vpop.f32.mrf.mxu0  ;;  %v6439_v37 = vpop.f32.mrf.mxu1 }
 0x1df   : > { %v6410_v7 = vadd.f32 %v2963_v5, %v6293_v22 }
 0x1e0   : > { %v4885_v30 = vpop.f32.mrf.mxu0  ;;  %v6447_v52 = vpop.f32.mrf.mxu1 }
 0x1e1   : > { %v6413_v25 = vadd.f32 %v4885_v30, %v6296_v35 }
 0x1e2   : > { %v2966_v6 = vpop.f32.mrf.mxu0  ;;  %v6453_v5 = vpop.f32.mrf.mxu1 }
 0x1e3   : > { %v6418_v12 = vadd.f32 %v2966_v6, %v6299_v51 }
 0x1e4   : > { %v4888_v53 = vpop.f32.mrf.mxu0 }
 0x1e5   : > { %v6421_v55 = vadd.f32 %v4888_v53, %v6302_v23 }
 0x1e6   : > { %v2979_v13 = vpop.f32.mrf.mxu0 }
 0x1e7   : > { %v6426_v22 = vadd.f32 %v2979_v13, %v6305_v33 }
 0x1e8   : > { %v4889_v54 = vpop.f32.mrf.mxu0 }
 0x1e9   : > { %v6429_v35 = vadd.f32 %v4889_v54, %v6308_v1 }
 0x1ea   : > { %v2982_v49 = vpop.f32.mrf.mxu0 }
 0x1eb   : > { %v6434_v51 = vadd.f32 %v2982_v49, %v6311_v48 }
 0x1ec   : > { %v4892_v31 = vpop.f32.mrf.mxu0 }
 0x1ed   : > { %v6437_v23 = vadd.f32 %v4892_v31, %v6314_v38 }
 0x1ee   : > { %v2995_v47 = vpop.f32.mrf.mxu0 }
 0x1ef   : > { %v6442_v33 = vadd.f32 %v2995_v47, %v6317_v41  ;;  %v6458_v41 = vld [vmem:[%s6662_s3] ss:$0 sm:$0xff] }
 0x1f0   : > { %v4893_v20 = vpop.f32.mrf.mxu0 }
 0x1f1   : > { %v6445_v1 = vadd.f32 %v4893_v20, %v6320_v28 }
 0x1f2   : > { %v2998_v27 = vpop.f32.mrf.mxu0 }
 0x1f3   : > { %v6450_v48 = vadd.f32 %v2998_v27, %v6323_v18  ;;  %v6463_v18 = vpop.f32.mrf.mxu1 }
 0x1f4   : > { %v4936_v62 = vpop.f32.mrf.mxu0 }
 0x1f5   : > { %6706 = vst [vmem:[#allocation13_spill] sm:$0xff] %v6450_v48  ;;  %v3773_v38 = vadd.f32 %v4936_v62, %v6328_v29 }
 0x1f6   : > { %v3628_v30 = vpop.f32.mrf.mxu0 }
 0x1f7   : > { %v3771_v28 = vadd.f32 %v3628_v30, %v6333_v0  ;;  %v3816_v53 = vadd.f32 %v6458_v41, %v3773_v38  ;;  %v6470_v30 = vpop.f32.mrf.mxu1 }
 0x1f8   : > { %v4937_v6 = vpop.f32.mrf.mxu0 }
 0x1f9   : > { %v3774_v13 = vadd.f32 %v4937_v6, %v6338_v36  ;;  %v3814_v29 = vadd.f32 %v6458_v41, %v3771_v28  ;;  %v3852_v20 = vmax.f32 %v3816_v53, 0.0 }
 0x1fa   : > { %v3631_v54 = vpop.f32.mrf.mxu0 }
 0x1fb   : > { %v3817_v49 = vadd.f32 %v6458_v41, %v3774_v13  ;;  %v3772_v31 = vadd.f32 %v3631_v54, %v6343_v26  ;;  %v3850_v36 = vmax.f32 %v3814_v29, 0.0  ;;  %v6479_v54 = vpop.f32.mrf.mxu1 }
 0x1fc   : > { %v4940_v47 = vpop.f32.mrf.mxu0 }
 0x1fd   : > { %v3853_v27 = vmax.f32 %v3817_v49, 0.0  ;;  %v3815_v62 = vadd.f32 %v6458_v41, %v3772_v31  ;;  %v3777_v0 = vadd.f32 %v4940_v47, %v6348_v24  ;;  %v3467_v24 = vadd.f32 %v6368_v42, %v6326_v39 }
 0x1fe   : > { %v3644_v38 = vpop.f32.mrf.mxu0 }
 0x1ff   : > { %v6472_v6 = vpack.c.bf16 %v3853_v27, %v3852_v20  ;;  %v3851_v4 = vmax.f32 %v3815_v62, 0.0  ;;  %v3775_v28 = vadd.f32 %v3644_v38, %v6353_v11  ;;  %v3820_v26 = vadd.f32 %v6458_v41, %v3777_v0  ;;  %v6491_v0 = vpop.f32.mrf.mxu1 }
 0x200   : > { %v4941_v48 = vpop.f32.mrf.mxu0  ;;  %v3465_v11 = vadd.f32 %v6373_v46, %v6331_v61  ;;  %v3468_v62 = vadd.f32 %v6378_v58, %v6336_v56  ;;  %v3466_v61 = vadd.f32 %v6386_v60, %v6341_v63  ;;  %v3471_v58 = vadd.f32 %v6399_v34, %v6346_v17 }
 0x201   : > { %v6475_v13 = vpack.c.bf16 %v3851_v4, %v3850_v36  ;;  %v3778_v53 = vadd.f32 %v4941_v48, %v6358_v8  ;;  %v3818_v29 = vadd.f32 %v6458_v41, %v3775_v28  ;;  %v3856_v20 = vmax.f32 %v3820_v26, 0.0 }
 0x202   : > { %v3647_v49 = vpop.f32.mrf.mxu0 }
 0x203   : > { %v3821_v31 = vadd.f32 %v6458_v41, %v3778_v53  ;;  %v3776_v47 = vadd.f32 %v3647_v49, %v6363_v2  ;;  %v3854_v42 = vmax.f32 %v3818_v29, 0.0  ;;  %v6500_v49 = vpop.f32.mrf.mxu1 }
 0x204   : > { %v4944_v4 = vpop.f32.mrf.mxu0 }
 0x205   : > { %v3857_v27 = vmax.f32 %v3821_v31, 0.0  ;;  %v3819_v8 = vadd.f32 %v6458_v41, %v3776_v47  ;;  %v3781_v48 = vadd.f32 %v4944_v4, %v3467_v24  ;;  %v3469_v47 = vadd.f32 %v6407_v40, %v6351_v9 }
 0x206   : > { %v3660_v39 = vpop.f32.mrf.mxu0  ;;  %v3470_v9 = vadd.f32 %v6423_v43, %v6361_v32 }
 0x207   : > { %v6493_v38 = vpack.c.bf16 %v3857_v27, %v3856_v20  ;;  %v3855_v36 = vmax.f32 %v3819_v8, 0.0  ;;  %v3779_v2 = vadd.f32 %v3660_v39, %v3465_v11  ;;  %v3824_v26 = vadd.f32 %v6458_v41, %v3781_v48  ;;  %v6511_v8 = vpop.f32.mrf.mxu1 }
 0x208   : > { %v4945_v28 = vpop.f32.mrf.mxu0  ;;  %v3472_v27 = vadd.f32 %v6415_v50, %v6356_v15  ;;  %v3475_v15 = vadd.f32 %v6431_v10, %v6366_v16 }
 0x209   : > { %v6497_v46 = vpack.c.bf16 %v3855_v36, %v3854_v42  ;;  %v3782_v53 = vadd.f32 %v4945_v28, %v3468_v62  ;;  %v3822_v24 = vadd.f32 %v6458_v41, %v3779_v2  ;;  %v3860_v60 = vmax.f32 %v3824_v26, 0.0  ;;  %v4923_v28 = vpop.f32.mrf.mxu1 }
 0x20a   : > { %v3663_v56 = vpop.f32.mrf.mxu0 }
 0x20b   : > { %v3825_v29 = vadd.f32 %v6458_v41, %v3782_v53  ;;  %v3780_v31 = vadd.f32 %v3663_v56, %v3466_v61  ;;  %v3858_v34 = vmax.f32 %v3822_v24, 0.0  ;;  %v3473_v56 = vadd.f32 %v6439_v37, %v6371_v3 }
 0x20c   : > { %v4948_v63 = vpop.f32.mrf.mxu0  ;;  %v3474_v3 = vadd.f32 %v6453_v5, %v6381_v21 }
 0x20d   : > { %v3861_v11 = vmax.f32 %v3825_v29, 0.0  ;;  %v3823_v4 = vadd.f32 %v6458_v41, %v3780_v31  ;;  %v3785_v20 = vadd.f32 %v4948_v63, %v3471_v58  ;;  %v3476_v31 = vadd.f32 %v6447_v52, %v6376_v14 }
 0x20e   : > { %v3676_v17 = vpop.f32.mrf.mxu0  ;;  %v3479_v14 = vadd.f32 %v6463_v18, %v6384_v44 }
 0x20f   : > { %v6513_v48 = vpack.c.bf16 %v3861_v11, %v3860_v60  ;;  %v3859_v62 = vmax.f32 %v3823_v4, 0.0  ;;  %v3783_v39 = vadd.f32 %v3676_v17, %v3469_v47  ;;  %v3828_v36 = vadd.f32 %v6458_v41, %v3785_v20  ;;  %v3413_v47 = vpop.f32.mrf.mxu1 }
 0x210   : > { %v4949_v42 = vpop.f32.mrf.mxu0 }
 0x211   : > { %v6517_v40 = vpack.c.bf16 %v3859_v62, %v3858_v34  ;;  %v3786_v2 = vadd.f32 %v4949_v42, %v3472_v27  ;;  %v3826_v50 = vadd.f32 %v6458_v41, %v3783_v39  ;;  %v3864_v32 = vmax.f32 %v3828_v36, 0.0  ;;  %v4926_v17 = vpop.f32.mrf.mxu1 }
 0x212   : > { %v3679_v61 = vpop.f32.mrf.mxu0  ;;  %v3477_v42 = vadd.f32 %v6470_v30, %v6392_v57  ;;  %v3478_v57 = vadd.f32 %v6491_v0, %v6402_v45 }
 0x213   : > { %v3829_v26 = vadd.f32 %v6458_v41, %v3786_v2  ;;  %v3784_v53 = vadd.f32 %v3679_v61, %v3470_v9  ;;  %v3862_v16 = vmax.f32 %v3826_v50, 0.0  ;;  %v3480_v61 = vadd.f32 %v6479_v54, %v6395_v19 }
 0x214   : > { %v4952_v58 = vpop.f32.mrf.mxu0  ;;  %v3483_v19 = vadd.f32 %v6500_v49, %v6405_v59 }
 0x215   : > { %v3865_v43 = vmax.f32 %v3829_v26, 0.0  ;;  %v3827_v24 = vadd.f32 %v6458_v41, %v3784_v53  ;;  %v3789_v29 = vadd.f32 %v4952_v58, %v3475_v15  ;;  %v3426_v15 = vpop.f32.mrf.mxu1 }
 0x216   : > { %v3692_v63 = vpop.f32.mrf.mxu0 }
 0x217   : > { %v6529_v10 = vpack.c.bf16 %v3865_v43, %v3864_v32  ;;  %v3863_v60 = vmax.f32 %v3827_v24, 0.0  ;;  %v3787_v11 = vadd.f32 %v3692_v63, %v3473_v56  ;;  %v3832_v20 = vadd.f32 %v6458_v41, %v3789_v29  ;;  %v4927_v43 = vpop.f32.mrf.mxu1 }
 0x218   : > { %v4953_v4 = vpop.f32.mrf.mxu0  ;;  %v3481_v63 = vadd.f32 %v6511_v8, %v6410_v7 }
 0x219   : > { %v6533_v37 = vpack.c.bf16 %v3863_v60, %v3862_v16  ;;  %v3790_v27 = vadd.f32 %v4953_v4, %v3476_v31  ;;  %v3830_v52 = vadd.f32 %v6458_v41, %v3787_v11  ;;  %v3868_v21 = vmax.f32 %v3832_v20, 0.0 }
 0x21a   : > { %v3695_v34 = vpop.f32.mrf.mxu0  ;;  %v3484_v4 = vadd.f32 %v4923_v28, %v6413_v25 }
 0x21b   : > { %v3833_v62 = vadd.f32 %v6458_v41, %v3790_v27  ;;  %v3788_v39 = vadd.f32 %v3695_v34, %v3474_v3  ;;  %v3866_v44 = vmax.f32 %v3830_v52, 0.0  ;;  %v3429_v3 = vpop.f32.mrf.mxu1  ;;  %v3482_v52 = vadd.f32 %v3413_v47, %v6418_v12 }
 0x21c   : > { %v4956_v9 = vpop.f32.mrf.mxu0 }
 0x21d   : > { %v3869_v5 = vmax.f32 %v3833_v62, 0.0  ;;  %v3831_v36 = vadd.f32 %v6458_v41, %v3788_v39  ;;  %v3793_v2 = vadd.f32 %v4956_v9, %v3479_v14  ;;  %v4930_v39 = vpop.f32.mrf.mxu1  ;;  %v3487_v9 = vadd.f32 %v4926_v17, %v6421_v55 }
 0x21e   : > { %v3708_v50 = vpop.f32.mrf.mxu0 }
 0x21f   : > { %v3867_v18 = vmax.f32 %v3831_v36, 0.0  ;;  %v3791_v26 = vadd.f32 %v3708_v50, %v3477_v42  ;;  %v6545_v53 = vpack.c.bf16 %v3869_v5, %v3868_v21  ;;  %v3836_v30 = vadd.f32 %v6458_v41, %v3793_v2 }
 0x220   : > { %v4957_v56 = vpop.f32.mrf.mxu0  ;;  %v3485_v5 = vadd.f32 %v3426_v15, %v6426_v22  ;;  %v3488_v50 = vadd.f32 %v4927_v43, %v6429_v35 }
 0x221   : > { %v3794_v58 = vadd.f32 %v4957_v56, %v3480_v61  ;;  %v6550_v32 = vpack.c.bf16 %v3867_v18, %v3866_v44  ;;  %v3834_v54 = vadd.f32 %v6458_v41, %v3791_v26  ;;  %v3872_v45 = vmax.f32 %v3836_v30, 0.0  ;;  %v3442_v44 = vpop.f32.mrf.mxu1 }
 0x222   : > { %v3711_v24 = vpop.f32.mrf.mxu0  ;;  %v3486_v30 = vadd.f32 %v3429_v3, %v6434_v51 }
 0x223   : > { %v3837_v29 = vadd.f32 %v6458_v41, %v3794_v58  ;;  %v3792_v31 = vadd.f32 %v3711_v24, %v3478_v57  ;;  %v3870_v27 = vmax.f32 %v3834_v54, 0.0  ;;  %v4931_v24 = vpop.f32.mrf.mxu1  ;;  %v3491_v54 = vadd.f32 %v4930_v39, %v6437_v23 }
 0x224   : > { %v4960_v16 = vpop.f32.mrf.mxu0 }
 0x225   : > { %v3873_v0 = vmax.f32 %v3837_v29, 0.0  ;;  %v3835_v60 = vadd.f32 %v6458_v41, %v3792_v31  ;;  %v3797_v11 = vadd.f32 %v4960_v16, %v3483_v19  ;;  %v3489_v31 = vadd.f32 %v3442_v44, %v6442_v33  ;;  %v4022_v44 = vld [vmem:[%s6663_s4 + $0x10] sm:$0xff] }
 0x226   : > { %v3724_v20 = vpop.f32.mrf.mxu0 }
 0x227   : > { %v3871_v59 = vmax.f32 %v3835_v60, 0.0  ;;  %v3795_v49 = vadd.f32 %v3724_v20, %v3481_v63  ;;  %v6560_v34 = vpack.c.bf16 %v3873_v0, %v3872_v45  ;;  %v3840_v7 = vadd.f32 %v6458_v41, %v3797_v11  ;;  %v3445_v11 = vpop.f32.mrf.mxu1 }
 0x228   : > { %v4961_v14 = vpop.f32.mrf.mxu0  ;;  %v3492_v60 = vadd.f32 %v4931_v24, %v6445_v1 }
 0x229   : > { %v3798_v8 = vadd.f32 %v4961_v14, %v3484_v4  ;;  %v6564_v62 = vpack.c.bf16 %v3871_v59, %v3870_v27  ;;  %v3838_v25 = vadd.f32 %v6458_v41, %v3795_v49  ;;  %v3876_v2 = vmax.f32 %v3840_v7, 0.0  ;;  %v6707_v49 = vld [vmem:[#allocation13_spill] sm:$0xff] }
 0x22a   : > { %v3727_v42 = vpop.f32.mrf.mxu0  ;;  %v3490_v14 = vadd.f32 %v3445_v11, %v6707_v49 }
 0x22b   : > { %v3841_v28 = vadd.f32 %v6458_v41, %v3798_v8  ;;  %v3796_v21 = vadd.f32 %v3727_v42, %v3482_v52  ;;  %v3874_v26 = vmax.f32 %v3838_v25, 0.0 }
 0x22c   : > { %v4964_v36 = vpop.f32.mrf.mxu0 }
 0x22d   : > { %v3877_v61 = vmax.f32 %v3841_v28, 0.0  ;;  %v3839_v12 = vadd.f32 %v6458_v41, %v3796_v21  ;;  %v3801_v47 = vadd.f32 %v4964_v36, %v3487_v9 }
 0x22e   : > { %v3740_v18 = vpop.f32.mrf.mxu0 }
 0x22f   : > { %v3875_v56 = vmax.f32 %v3839_v12, 0.0  ;;  %v3799_v55 = vadd.f32 %v3740_v18, %v3485_v5  ;;  %v3900_v17 = vpack.c.bf16 %v3877_v61, %v3876_v2  ;;  %v3844_v58 = vadd.f32 %v6458_v41, %v3801_v47  ;;  %v4026_v61 = vld [vmem:[%s6663_s4 + $0x30] sm:$0xff]  ;;  %v4025_v12 = vld [vmem:[%s6663_s4 + $0x28] sm:$0xff]  ;;  %v4024_v47 = vld [vmem:[%s6663_s4 + $0x20] sm:$0xff] }
 0x230   : > { %v4965_v57 = vpop.f32.mrf.mxu0  ;;  %v4021_v18 = vld [vmem:[%s6663_s4 + $0x8] sm:$0xff] }
 0x231   : > { %v3802_v22 = vadd.f32 %v4965_v57, %v3488_v50  ;;  %v3899_v15 = vpack.c.bf16 %v3875_v56, %v3874_v26  ;;  %v3842_v29 = vadd.f32 %v6458_v41, %v3799_v55  ;;  %v3880_v16 = vmax.f32 %v3844_v58, 0.0  ;;  %v4023_v50 = vld [vmem:[%s6663_s4 + $0x18] sm:$0xff]  ;;  %v4020_v26 = vld [vmem:[%s6663_s4] sm:$0xff] }
 0x232   : > { %v3743_v19 = vpop.f32.mrf.mxu0 }
 0x233   : > { %v3845_v35 = vadd.f32 %v6458_v41, %v3802_v22  ;;  %v3800_v43 = vadd.f32 %v3743_v19, %v3486_v30  ;;  %v3878_v3 = vmax.f32 %v3842_v29, 0.0  ;;  %v4036_v29 = vld [vmem:[%s6664_s5] sm:$0x1] }
 0x234   : > { %v4968_v63 = vpop.f32.mrf.mxu0 }
 0x235   : > { %v3881_v45 = vmax.f32 %v3845_v35, 0.0  ;;  %v3843_v51 = vadd.f32 %v6458_v41, %v3800_v43  ;;  %v3805_v0 = vadd.f32 %v4968_v63, %v3491_v54 }
 0x236   : > { %v3756_v4 = vpop.f32.mrf.mxu0 }
 0x237   : > { %v3879_v20 = vmax.f32 %v3843_v51, 0.0  ;;  %v3803_v23 = vadd.f32 %v3756_v4, %v3489_v31  ;;  %v3902_v27 = vpack.c.bf16 %v3881_v45, %v3880_v16  ;;  %v3848_v52 = vadd.f32 %v6458_v41, %v3805_v0 }
 0x238   : > { %v4969_v59 = vpop.f32.mrf.mxu0 }
 0x239   : > { %v3806_v33 = vadd.f32 %v4969_v59, %v3492_v60  ;;  %4586 = vmatprep.subr.bf16.mxu1 %v3902_v27  ;;  %v3901_v7 = vpack.c.bf16 %v3879_v20, %v3878_v3  ;;  %v3846_v39 = vadd.f32 %v6458_v41, %v3803_v23  ;;  %v3884_v9 = vmax.f32 %v3848_v52, 0.0 }
 0x23a   : > { %v3759_v8 = vpop.f32.mrf.mxu0  ;;  %4587 = vmatpush3.bf16.msra.mxu1 %v6529_v10  ;;  %v4032_v10 = vld [vmem:[%s6663_s4 + $0x60] sm:$0xff] }
 0x23b   : > { %v3849_v1 = vadd.f32 %v6458_v41, %v3806_v33  ;;  %v3804_v42 = vadd.f32 %v3759_v8, %v3490_v14  ;;  %4588 = vmatprep.subr.bf16.mxu1 %v3901_v7  ;;  %v3882_v21 = vmax.f32 %v3846_v39, 0.0 }
 0x23d   : > { %v3885_v25 = vmax.f32 %v3849_v1, 0.0  ;;  %v3847_v28 = vadd.f32 %v6458_v41, %v3804_v42  ;;  %v5125_v41 = vmov 0.0  }
 0x23e   : > { %4589 = vmatpush3.bf16.msra.mxu1 %v6533_v37  ;;  %v4031_v37 = vld [vmem:[%s6663_s4 + $0x58] sm:$0xff] }
 0x23f   : > { %v3904_v5 = vpack.c.bf16 %v3885_v25, %v3884_v9  ;;  %v3883_v36 = vmax.f32 %v3847_v28, 0.0  ;;  %4590 = vmatprep.subr.bf16.mxu1 %v3900_v17 }
 0x241   : > { %v3903_v2 = vpack.c.bf16 %v3883_v36, %v3882_v21 }
 0x242   : > { %4591 = vmatpush3.bf16.msra.mxu1 %v6513_v48  ;;  %v6708_v48 = vld [vmem:[#allocation12_spill] sm:$0xff] }
 0x243   : > { %4592 = vmatprep.subr.bf16.mxu1 %v3899_v15 }
 0x246   : > { %4593 = vmatpush3.bf16.msra.mxu1 %v6517_v40  ;;  %v3937_v40 = vsel %vm985_vm3, %v3904_v5, 0 }
 0x247   : > { %4594 = vmatprep.subr.bf16.mxu1 %v6560_v34  ;;  %v4028_v34 = vld [vmem:[%s6663_s4 + $0x40] sm:$0xff] }
 0x24a   : > { %4595 = vmatpush3.bf16.msra.mxu1 %v6493_v38  ;;  %v3928_v38 = vcombine.high %v6708_v48, %v6708_v48 }
 0x24b   : > { %4596 = vmatprep.subr.bf16.mxu1 %v6564_v62  ;;  %v4027_v62 = vld [vmem:[%s6663_s4 + $0x38] sm:$0xff] }
 0x24e   : > { %4597 = vmatpush3.bf16.msra.mxu1 %v6497_v46  ;;  %v4033_v46 = vld [vmem:[%s6663_s4 + $0x68] sm:$0xff] }
 0x24f   : > { %4598 = vmatprep.subr.bf16.mxu1 %v6545_v53  ;;  %v4030_v53 = vld [vmem:[%s6663_s4 + $0x50] sm:$0xff] }
 0x252   : > { %4599 = vmatpush3.bf16.msra.mxu1 %v6472_v6  ;;  %v4035_v6 = vld [vmem:[%s6663_s4 + $0x78] sm:$0xff] }
 0x253   : > { %4600 = vmatprep.subr.bf16.mxu1 %v6550_v32  ;;  %v4029_v32 = vld [vmem:[%s6663_s4 + $0x48] sm:$0xff] }
 0x256   : > { %4601 = vmatpush3.bf16.msra.mxu1 %v6475_v13  ;;  %v4034_v13 = vld [vmem:[%s6663_s4 + $0x70] sm:$0xff] }
 0x257   : > { %4970 = vmatprep.subr.bf16.mxu1 %v5125_v41 }
 0x259   : > { %3972 = vmatmul.mubr.bf16.vlgmr.msra.gmra.mxu1 %v6708_v48 }
 0x25a   : > { %4971 = vmatpush3.bf16.msra.mxu1 %v3937_v40  ;;  %4974 = vmatprep.mubr.msk.bf16.mxu1 %vm5126_vm8, %v5125_v41 }
 0x25b   : > { %4972 = vmatprep.subr.bf16.mxu1 %v5125_v41 }
 0x25e   : > { %4973 = vmatpush3.bf16.msra.mxu1 %v3903_v2 }
 0x25f   : > { %4978 = vmatprep.subr.mxu1 %v5125_v41 }
 0x261   : > { %4975 = vmatmul.mubr.msk.bf16.vlgmr.msra.gmra.mxu1 %vm3931_vm9, %v3928_v38 }
 0x262   : > { %4979 = vmatpush3.msra.mxu1 %v4035_v6  ;;  %5010 = vmatprep.mubr.msk.f32.mxu1 %vm5126_vm8, %v5125_v41 }
 0x263   : > { %4980 = vmatprep.subr.mxu1 %v5125_v41 }
 0x264   : > { %4981 = vmatpush3.msra.mxu1 %v4034_v13 }
 0x265   : > { %4982 = vmatprep.subr.mxu1 %v5125_v41 }
 0x266   : > { %4983 = vmatpush3.msra.mxu1 %v4033_v46 }
 0x267   : > { %4984 = vmatprep.subr.mxu1 %v5125_v41 }
 0x268   : > { %4985 = vmatpush3.msra.mxu1 %v4032_v10 }
 0x269   : > { %4986 = vmatprep.subr.mxu1 %v5125_v41 }
 0x26a   : > { %4987 = vmatpush3.msra.mxu1 %v4031_v37 }
 0x26b   : > { %4988 = vmatprep.subr.mxu1 %v5125_v41 }
 0x26c   : > { %4989 = vmatpush3.msra.mxu1 %v4030_v53 }
 0x26d   : > { %4990 = vmatprep.subr.mxu1 %v5125_v41 }
 0x26e   : > { %4991 = vmatpush3.msra.mxu1 %v4029_v32 }
 0x26f   : > { %4992 = vmatprep.subr.mxu1 %v5125_v41 }
 0x270   : > { %4993 = vmatpush3.msra.mxu1 %v4028_v34 }
 0x271   : > { %4994 = vmatprep.subr.mxu1 %v5125_v41 }
 0x272   : > { %4995 = vmatpush3.msra.mxu1 %v4027_v62 }
 0x273   : > { %4996 = vmatprep.subr.mxu1 %v5125_v41 }
 0x274   : > { %4997 = vmatpush3.msra.mxu1 %v4026_v61 }
 0x275   : > { %4998 = vmatprep.subr.mxu1 %v5125_v41 }
 0x276   : > { %4999 = vmatpush3.msra.mxu1 %v4025_v12 }
 0x277   : > { %5000 = vmatprep.subr.mxu1 %v5125_v41 }
 0x278   : > { %5001 = vmatpush3.msra.mxu1 %v4024_v47 }
 0x279   : > { %5002 = vmatprep.subr.mxu1 %v5125_v41 }
 0x27a   : > { %5003 = vmatpush3.msra.mxu1 %v4023_v50 }
 0x27b   : > { %5004 = vmatprep.subr.mxu1 %v5125_v41 }
 0x27c   : > { %5005 = vmatpush3.msra.mxu1 %v4022_v44 }
 0x27d   : > { %5006 = vmatprep.subr.mxu1 %v5125_v41 }
 0x27e   : > { %5007 = vmatpush3.msra.mxu1 %v4021_v18 }
 0x27f   : > { %5008 = vmatprep.subr.mxu1 %v5125_v41 }
 0x280   : > { %5009 = vmatpush3.msra.mxu1 %v4020_v26 }
 0x319   : > { %v4602_v56 = vpop.f32.mrf.mxu1 }
 0x31b   : > { %v4603_v55 = vpop.f32.mrf.mxu1 }
 0x31c   : > { %v4604_v30 = vadd.f32 %v4603_v55, %v4602_v56 }
 0x31d   : > { %v4605_v17 = vpop.f32.mrf.mxu1 }
 0x31f   : > { %v4606_v57 = vpop.f32.mrf.mxu1 }
 0x321   : > { %v4013_v58 = vpop.f32.mrf.mxu1 }
 0x322   : > { %v4014_v22 = vadd.f32 %v4604_v30, %v4013_v58 }
 0x323   : > { %v4976_v15 = vpop.f32.mrf.mxu1 }
 0x324   : > { %v4019_v24 = vmul.f32 0.00390625, %v4014_v22 }
 0x325   : > { %v4016_v19 = vpop.f32.mrf.mxu1 }
 0x326   : > { %5011 = vmatmul.mubr.f32.vlgmr.msra.gmra.mxu1 %v4019_v24 }
 0x327   : > { %v4977_v54 = vpop.f32.mrf.mxu1 }
 0x3e6   : > { %v4103_v35 = vpop.f32.mrf.mxu1 }
 0x3e7   : > { %v4104_v43 = vadd.f32 %v4103_v35, %v4036_v29 }
 0x3e8   : > { %v5012_v31 = vpop.f32.mrf.mxu1 }
 0x3e9   : > { %4107 = vst [vmem:[%s247_s17] sm:$0x1] %v4104_v43 }
 0x3ea PF: > { %s16_s21 = sadd.s32 1, %s5122_s21  }
 0x3eb   : > { %p13_p4 = scmp.ge.s32.totalorder %s16_s21, 4  }
 0x3ed   :  { %15 = sbr.rel (!%p13_p4) target bundleno = 1 (0x1), region = 82 }

</bundles_post_ra>
